<compile_context>
chip_gen: v5e
topology: v5e:2x2
jax: 0.10.0
libtpu: 0.0.40
codegen_flags: <defaults>
</compile_context>

<pallas_src>
import math

import jax
import jax.numpy as jnp
from jax.experimental import pallas as pl
from jax.experimental.pallas import tpu as pltpu

LANE = 128  # TPU lane width


def _round_up(x, m):
    return ((x + m - 1) // m) * m


def _make_basic_block_kernel(nb, Ho, Wo, Kp, Cp):
    """nb images per grid step; conv1 K padded to Kp, channel dims padded to Cp (lane-dense)."""
    Mc = nb * Ho * Wo

    def kernel(xcol_ref, w1sc_ref, w2_ref, bias_ref, out_ref, pad_ref, xcol2_ref):
        bias = bias_ref[...]                                   # (2, Cp) f32
        b1 = bias[0:1, :]                                      # bn1 bias (scale folded in w1)
        b2s = bias[1:2, :]                                     # bn2 bias + bn_sc bias combined

        # ---- conv1 (+bn1 scale) and 1x1 projection shortcut (+bn_sc scale): ONE MXU matmul ----
        # (Mc, Kp) bf16 @ (Kp, 2*Cp) bf16 -> f32
        acc = jnp.dot(xcol_ref[...], w1sc_ref[...],
                      preferred_element_type=jnp.float32)      # (Mc, 2*Cp)
        out1 = jnp.maximum(acc[:, :Cp] + b1, 0.0)              # bn1 bias + ReLU (lane-dense)
        shortcut = acc[:, Cp:]                                 # projection path (bias in b2s)

        # ---- stage out1 (bf16, cast exactly once) in the spatially padded buffer ----
        # Only the border needs zeroing: the interior is fully overwritten every step.
        zrow = jnp.zeros((nb, 1, Wo + 2, Cp), jnp.bfloat16)
        zcol = jnp.zeros((nb, Ho, 1, Cp), jnp.bfloat16)
        pad_ref[:, pl.ds(0, 1), :, :] = zrow                   # top border row
        pad_ref[:, pl.ds(Ho + 1, 1), :, :] = zrow              # bottom border row
        pad_ref[:, pl.ds(1, Ho), pl.ds(0, 1), :] = zcol        # left border column
        pad_ref[:, pl.ds(1, Ho), pl.ds(Wo + 1, 1), :] = zcol   # right border column
        pad_ref[:, pl.ds(1, Ho), pl.ds(1, Wo), :] = (
            out1.astype(jnp.bfloat16).reshape(nb, Ho, Wo, Cp))

        # ---- in-kernel im2col for conv2: 9 lane-block-aligned column stores into VMEM ----
        for t in range(9):
            ky, kx = t // 3, t % 3
            xcol2_ref[:, :, :, pl.ds(t * Cp, Cp)] = (
                pad_ref[:, pl.ds(ky, Ho), pl.ds(kx, Wo), :])

        # ---- conv2 (+bn2 scale): ONE K = 9*Cp matmul (fills the 256-deep MXU on v6e/v7x) ----
        acc2 = jnp.dot(xcol2_ref[...].reshape(Mc, 9 * Cp), w2_ref[...],
                       preferred_element_type=jnp.float32)     # (Mc, Cp)

        # ---- residual add + combined biases + final ReLU; lane-dense unmasked store ----
        out_ref[...] = jnp.maximum(acc2 + shortcut + b2s, 0.0).astype(out_ref.dtype)

    return kernel


def basic_block_forward(x_nchw, params, stride):
    """Pallas implementation of BasicBlock.forward (projection shortcut, BatchNorm eval mode)."""
    N, Cin, H, W = x_nchw.shape
    w1, w2, wsc = params["w1"], params["w2"], params["wsc"]    # PyTorch OIHW weights
    Cout = w1.shape[0]
    s = stride
    Ho = (H - 1) // s + 1                                      # conv1 (k3,p1,s) == shortcut (k1,s)
    Wo = (W - 1) // s + 1
    Cp = _round_up(Cout, LANE)                                 # channels -> lane width
    K1 = 9 * Cin
    Kp = _round_up(K1, LANE)                                   # conv1 K -> lane-dense loads

    # ---- fold BatchNorm (eval mode) into per-channel weight scale + bias ----
    def fold(g, b, m, v):
        sc = g / jnp.sqrt(v + 1e-5)
        return sc, b - m * sc

    s1, b1 = fold(*params["bn1"])
    s2, b2 = fold(*params["bn2"])
    ssc, bsc = fold(*params["bn_sc"])

    def pad_c(a):                                              # zero-pad last axis Cout -> Cp
        return jnp.pad(a, [(0, 0)] * (a.ndim - 1) + [(0, Cp - Cout)])

    # conv1 weight (bn1 scale folded) + 1x1 projection weight (bn_sc scale folded, embedded at the
    # centre-tap rows) -> one (Kp, 2*Cp) bf16 weight; K rows zero-padded to the lane width.
    w1f = pad_c(jnp.transpose(w1, (2, 3, 1, 0)) * s1).reshape(K1, Cp)
    wscf = pad_c(jnp.transpose(wsc[:, :, 0, 0], (1, 0)) * ssc)                  # (Cin, Cp)
    wsc_full = jnp.zeros((K1, Cp), jnp.float32).at[4 * Cin:5 * Cin, :].set(wscf)
    w1sc = jnp.concatenate([w1f, wsc_full], axis=1)                             # (K1, 2*Cp)
    w1sc = jnp.pad(w1sc, ((0, Kp - K1), (0, 0))).astype(jnp.bfloat16)           # (Kp, 2*Cp)

    # conv2 weight (bn2 scale folded), channels padded, im2col layout (9*Cp, Cp) for one matmul
    w2f = jnp.transpose(w2, (2, 3, 1, 0)) * s2                                  # (3,3,Cout,Cout)
    w2f = jnp.pad(w2f, ((0, 0), (0, 0), (0, Cp - Cout), (0, Cp - Cout)))
    w2k = w2f.reshape(9 * Cp, Cp).astype(jnp.bfloat16)

    # biases: row0 = bn1 bias; row1 = bn2 bias + bn_sc bias (both added before the final ReLU)
    bias = jnp.stack([pad_c(b1), pad_c(b2 + bsc)], axis=0).astype(jnp.float32)  # (2, Cp)

    # ---- im2col of the padded input, built directly in bf16, K zero-padded to Kp ----
    xt = jnp.transpose(x_nchw, (0, 2, 3, 1)).astype(jnp.bfloat16)               # NHWC bf16
    xp = jnp.pad(xt, ((0, 0), (1, 1), (1, 1), (0, 0)))
    taps = [xp[:, ky:ky + (Ho - 1) * s + 1:s, kx:kx + (Wo - 1) * s + 1:s, :]
            for ky in range(3) for kx in range(3)]
    xcol = jnp.concatenate(taps, axis=-1).reshape(N * Ho * Wo, K1)
    xcol = jnp.pad(xcol, ((0, 0), (0, Kp - K1)))                                # (N*Ho*Wo, Kp)

    # ---- batch chunking: target ~1024 matmul rows / step; >=2 grid steps when N allows (v7x) ----
    rows = Ho * Wo
    req = 8 // math.gcd(rows, 8)                       # nb multiple keeping Mc a multiple of 8
    nb = max(1, min(1024 // rows, N)) if rows <= 1024 else 1
    if N >= 2 * req:                                   # keep >=2 grid steps (megacore split)
        nb = min(nb, max(req, (N + 1) // 2))
    nb = max(req, _round_up(nb, req))
    Np = _round_up(N, nb)                              # cdiv-style grid: pad batch with zero rows
    if Np > N:
        xcol = jnp.pad(xcol, ((0, (Np - N) * rows), (0, 0)))
    num_chunks = Np // nb
    Mc = nb * rows

    # VMEM budget: double-buffered I/O blocks + weights + scratch + in-body f32 temps
    est = (2 * Mc * Kp * 2 + 2 * Mc * Cp * 4 + Kp * 2 * Cp * 2 + 9 * Cp * Cp * 2
           + nb * (Ho + 2) * (Wo + 2) * Cp * 2 + Mc * 9 * Cp * 2 + 5 * Mc * Cp * 4)
    vmem_limit = int(min(64 * 1024 * 1024, max(32 * 1024 * 1024, 2 * est)))

    kernel = _make_basic_block_kernel(nb, Ho, Wo, Kp, Cp)
    out2d = pl.pallas_call(
        kernel,
        out_shape=jax.ShapeDtypeStruct((Np * rows, Cp), jnp.float32),
        grid_spec=pltpu.PrefetchScalarGridSpec(
            num_scalar_prefetch=0,
            grid=(num_chunks,),
            in_specs=[
                pl.BlockSpec((Mc, Kp), lambda i: (i, 0)),          # conv1 im2col activations
                pl.BlockSpec((Kp, 2 * Cp), lambda i: (0, 0)),      # conv1 + shortcut weight
                pl.BlockSpec((9 * Cp, Cp), lambda i: (0, 0)),      # conv2 weight (im2col layout)
                pl.BlockSpec((2, Cp), lambda i: (0, 0)),           # folded BN biases
            ],
            out_specs=pl.BlockSpec((Mc, Cp), lambda i: (i, 0)),    # lane-dense output
            scratch_shapes=[
                pltpu.VMEM((nb, Ho + 2, Wo + 2, Cp), jnp.bfloat16),   # conv2 staging (bf16)
                pltpu.VMEM((nb, Ho, Wo, 9 * Cp), jnp.bfloat16),       # conv2 im2col (bf16)
            ],
        ),
        compiler_params=pltpu.CompilerParams(
            dimension_semantics=("parallel",),
            vmem_limit_bytes=vmem_limit),
    )(xcol, w1sc, w2k, bias)

    out = out2d[:N * rows, :Cout].reshape(N, Ho, Wo, Cout)     # drop batch/channel padding
    return jnp.transpose(out, (0, 3, 1, 2))                    # back to NCHW


def _ref_basic_block(x_nchw, params, stride):
    """Pure-JAX f32 reference (same semantics as the PyTorch module in eval mode)."""
    x = jnp.transpose(x_nchw, (0, 2, 3, 1))

    def conv(inp, w_oihw, st, pad):
        return jax.lax.conv_general_dilated(
            inp, jnp.transpose(w_oihw, (2, 3, 1, 0)),
            window_strides=(st, st), padding=pad,
            dimension_numbers=("NHWC", "HWIO", "NHWC"))

    def bn(inp, g, b, m, v):
        return g * (inp - m) / jnp.sqrt(v + 1e-5) + b

    out = jax.nn.relu(bn(conv(x, params["w1"], stride, ((1, 1), (1, 1))), *params["bn1"]))
    out = bn(conv(out, params["w2"], 1, ((1, 1), (1, 1))), *params["bn2"])
    sc = bn(conv(x, params["wsc"], stride, ((0, 0), (0, 0))), *params["bn_sc"])
    return jnp.transpose(jax.nn.relu(out + sc), (0, 3, 1, 2))


if __name__ == "__main__":
    # BasicBlock(input_channels=4, output_channels=8, first_stride=2,
    #            projection=True, normalization='batch', weight_standard=False)
    N, Cin, H, W = 2, 4, 16, 16
    Cout, stride = 8, 2

    keys = jax.random.split(jax.random.PRNGKey(0), 16)
    x = jax.random.normal(keys[0], (N, Cin, H, W), jnp.float32)

    def bn_params(k0, k1, k2, k3):
        return (1.0 + 0.1 * jax.random.normal(k0, (Cout,), jnp.float32),   # gamma
                0.1 * jax.random.normal(k1, (Cout,), jnp.float32),         # beta
                0.1 * jax.random.normal(k2, (Cout,), jnp.float32),         # running_mean
                0.5 + 0.5 * jax.random.uniform(k3, (Cout,), jnp.float32))  # running_var

    params = {
        "w1": 0.3 * jax.random.normal(keys[1], (Cout, Cin, 3, 3), jnp.float32),
        "w2": 0.3 * jax.random.normal(keys[2], (Cout, Cout, 3, 3), jnp.float32),
        "wsc": 0.3 * jax.random.normal(keys[3], (Cout, Cin, 1, 1), jnp.float32),
        "bn1": bn_params(keys[4], keys[5], keys[6], keys[7]),
        "bn2": bn_params(keys[8], keys[9], keys[10], keys[11]),
        "bn_sc": bn_params(keys[12], keys[13], keys[14], keys[15]),
    }

    out = jax.block_until_ready(basic_block_forward(x, params, stride))
    ref = jax.block_until_ready(_ref_basic_block(x, params, stride))

    assert out.shape == (N, Cout, H // stride, W // stride), out.shape
    # bf16 MXU inputs with f32 accumulation vs. a pure-f32 reference: check scale-relative error.
    max_err = float(jnp.max(jnp.abs(out - ref)))
    scale = float(jnp.max(jnp.abs(ref))) + 1e-6
    if max_err > 2e-2 * scale:
        raise AssertionError(f"Pallas BasicBlock mismatch: max_err={max_err}, scale={scale}")
    print("KERNEL_OK")
</pallas_src>

<mosaic_0001>
module attributes {stable_mosaic.version = 11 : i64} {
  func.func @kernel(%arg0: i32, %arg1: memref<64x128xbf16, #tpu.memory_space<vmem>>, %arg2: memref<128x256xbf16, #tpu.memory_space<vmem>>, %arg3: memref<1152x128xbf16, #tpu.memory_space<vmem>>, %arg4: memref<2x128xf32, #tpu.memory_space<vmem>>, %arg5: memref<64x128xf32, #tpu.memory_space<vmem>>, %arg6: memref<1x10x10x128xbf16, #tpu.memory_space<vmem>>, %arg7: memref<1x8x8x1152xbf16, #tpu.memory_space<vmem>>) attributes {dimension_semantics = [#tpu.dimension_semantics<parallel>], iteration_bounds = array<i64: 2>, scalar_prefetch = 0 : i64, scratch_operands = 2 : i64, tpu.core_type = #tpu.core_type<tc>, window_params = [{transform_indices = @transform_0, window_bounds = array<i64: 64, 128>}, {pipeline_mode = #tpu.pipeline_mode<synchronous>, transform_indices = @transform_1, window_bounds = array<i64: 128, 256>}, {pipeline_mode = #tpu.pipeline_mode<synchronous>, transform_indices = @transform_2, window_bounds = array<i64: 1152, 128>}, {pipeline_mode = #tpu.pipeline_mode<synchronous>, transform_indices = @transform_3, window_bounds = array<i64: 2, 128>}, {transform_indices = @transform_4, window_bounds = array<i64: 64, 128>}]} {
    %c0 = arith.constant 0 : index
    %c0_0 = arith.constant 0 : index
    %0 = vector.load %arg4[%c0, %c0_0] : memref<2x128xf32, #tpu.memory_space<vmem>>, vector<2x128xf32>
    %1 = vector.extract_strided_slice %0 {offsets = [0, 0], sizes = [1, 128], strides = [1, 1]} : vector<2x128xf32> to vector<1x128xf32>
    %2 = vector.extract_strided_slice %0 {offsets = [1, 0], sizes = [1, 128], strides = [1, 1]} : vector<2x128xf32> to vector<1x128xf32>
    %c0_1 = arith.constant 0 : index
    %c0_2 = arith.constant 0 : index
    %3 = vector.load %arg1[%c0_1, %c0_2] : memref<64x128xbf16, #tpu.memory_space<vmem>>, vector<64x128xbf16>
    %c0_3 = arith.constant 0 : index
    %c0_4 = arith.constant 0 : index
    %4 = vector.load %arg2[%c0_3, %c0_4] : memref<128x256xbf16, #tpu.memory_space<vmem>>, vector<128x256xbf16>
    %cst = arith.constant dense<0.000000e+00> : vector<64x256xf32>
    %5 = tpu.matmul %3, %4, %cst {dimension_numbers = #tpu.dot_dimension_numbers<[1], [0], [0], [1], [0, 0, 1, 1], [], []>} : vector<64x128xbf16>, vector<128x256xbf16>, vector<64x256xf32> -> vector<64x256xf32>
    %6 = vector.extract_strided_slice %5 {offsets = [0, 0], sizes = [64, 128], strides = [1, 1]} : vector<64x256xf32> to vector<64x128xf32>
    %7 = vector.broadcast %1 : vector<1x128xf32> to vector<64x128xf32>
    %8 = arith.addf %6, %7 : vector<64x128xf32>
    %cst_5 = arith.constant 0.000000e+00 : f32
    %9 = vector.broadcast %cst_5 : f32 to vector<64x128xf32>
    %10 = arith.maximumf %8, %9 : vector<64x128xf32>
    %11 = vector.extract_strided_slice %5 {offsets = [0, 128], sizes = [64, 128], strides = [1, 1]} : vector<64x256xf32> to vector<64x128xf32>
    %cst_6 = arith.constant 0.000000e+00 : bf16
    %12 = vector.broadcast %cst_6 : bf16 to vector<1x1x10x128xbf16>
    %cst_7 = arith.constant 0.000000e+00 : bf16
    %13 = vector.broadcast %cst_7 : bf16 to vector<1x8x1x128xbf16>
    %c0_8 = arith.constant 0 : index
    %c0_9 = arith.constant 0 : index
    %c0_10 = arith.constant 0 : index
    %c0_11 = arith.constant 0 : index
    %14 = vector.load %arg6[%c0_8, %c0_9, %c0_10, %c0_11] : memref<1x10x10x128xbf16, #tpu.memory_space<vmem>>, vector<1x1x10x128xbf16>
    tpu.vector_store %arg6[%c0_8, %c0_9, %c0_10, %c0_11], %12 {strides = array<i32>} : memref<1x10x10x128xbf16, #tpu.memory_space<vmem>>, vector<1x1x10x128xbf16>,
    %c0_12 = arith.constant 0 : index
    %c9 = arith.constant 9 : index
    %c0_13 = arith.constant 0 : index
    %c0_14 = arith.constant 0 : index
    %15 = vector.load %arg6[%c0_12, %c9, %c0_13, %c0_14] : memref<1x10x10x128xbf16, #tpu.memory_space<vmem>>, vector<1x1x10x128xbf16>
    tpu.vector_store %arg6[%c0_12, %c9, %c0_13, %c0_14], %12 {strides = array<i32>} : memref<1x10x10x128xbf16, #tpu.memory_space<vmem>>, vector<1x1x10x128xbf16>,
    %c0_15 = arith.constant 0 : index
    %c1 = arith.constant 1 : index
    %c0_16 = arith.constant 0 : index
    %c0_17 = arith.constant 0 : index
    %16 = vector.load %arg6[%c0_15, %c1, %c0_16, %c0_17] : memref<1x10x10x128xbf16, #tpu.memory_space<vmem>>, vector<1x8x1x128xbf16>
    tpu.vector_store %arg6[%c0_15, %c1, %c0_16, %c0_17], %13 {strides = array<i32>} : memref<1x10x10x128xbf16, #tpu.memory_space<vmem>>, vector<1x8x1x128xbf16>,
    %c0_18 = arith.constant 0 : index
    %c1_19 = arith.constant 1 : index
    %c9_20 = arith.constant 9 : index
    %c0_21 = arith.constant 0 : index
    %17 = vector.load %arg6[%c0_18, %c1_19, %c9_20, %c0_21] : memref<1x10x10x128xbf16, #tpu.memory_space<vmem>>, vector<1x8x1x128xbf16>
    tpu.vector_store %arg6[%c0_18, %c1_19, %c9_20, %c0_21], %13 {strides = array<i32>} : memref<1x10x10x128xbf16, #tpu.memory_space<vmem>>, vector<1x8x1x128xbf16>,
    %18 = arith.truncf %10 : vector<64x128xf32> to vector<64x128xbf16>
    %19 = vector.shape_cast %18 : vector<64x128xbf16> to vector<1x8x8x128xbf16>
    %c0_22 = arith.constant 0 : index
    %c1_23 = arith.constant 1 : index
    %c1_24 = arith.constant 1 : index
    %c0_25 = arith.constant 0 : index
    %20 = vector.load %arg6[%c0_22, %c1_23, %c1_24, %c0_25] : memref<1x10x10x128xbf16, #tpu.memory_space<vmem>>, vector<1x8x8x128xbf16>
    tpu.vector_store %arg6[%c0_22, %c1_23, %c1_24, %c0_25], %19 {strides = array<i32>} : memref<1x10x10x128xbf16, #tpu.memory_space<vmem>>, vector<1x8x8x128xbf16>,
    %c0_26 = arith.constant 0 : index
    %c0_27 = arith.constant 0 : index
    %c0_28 = arith.constant 0 : index
    %c0_29 = arith.constant 0 : index
    %21 = vector.load %arg6[%c0_26, %c0_27, %c0_28, %c0_29] : memref<1x10x10x128xbf16, #tpu.memory_space<vmem>>, vector<1x8x8x128xbf16>
    %c0_30 = arith.constant 0 : index
    %c0_31 = arith.constant 0 : index
    %c0_32 = arith.constant 0 : index
    %c0_33 = arith.constant 0 : index
    %22 = vector.load %arg7[%c0_30, %c0_31, %c0_32, %c0_33] : memref<1x8x8x1152xbf16, #tpu.memory_space<vmem>>, vector<1x8x8x128xbf16>
    tpu.vector_store %arg7[%c0_30, %c0_31, %c0_32, %c0_33], %21 {strides = array<i32>} : memref<1x8x8x1152xbf16, #tpu.memory_space<vmem>>, vector<1x8x8x128xbf16>,
    %c0_34 = arith.constant 0 : index
    %c0_35 = arith.constant 0 : index
    %c1_36 = arith.constant 1 : index
    %c0_37 = arith.constant 0 : index
    %23 = vector.load %arg6[%c0_34, %c0_35, %c1_36, %c0_37] : memref<1x10x10x128xbf16, #tpu.memory_space<vmem>>, vector<1x8x8x128xbf16>
    %c0_38 = arith.constant 0 : index
    %c0_39 = arith.constant 0 : index
    %c0_40 = arith.constant 0 : index
    %c128 = arith.constant 128 : index
    %24 = vector.load %arg7[%c0_38, %c0_39, %c0_40, %c128] : memref<1x8x8x1152xbf16, #tpu.memory_space<vmem>>, vector<1x8x8x128xbf16>
    tpu.vector_store %arg7[%c0_38, %c0_39, %c0_40, %c128], %23 {strides = array<i32>} : memref<1x8x8x1152xbf16, #tpu.memory_space<vmem>>, vector<1x8x8x128xbf16>,
    %c0_41 = arith.constant 0 : index
    %c0_42 = arith.constant 0 : index
    %c2 = arith.constant 2 : index
    %c0_43 = arith.constant 0 : index
    %25 = vector.load %arg6[%c0_41, %c0_42, %c2, %c0_43] : memref<1x10x10x128xbf16, #tpu.memory_space<vmem>>, vector<1x8x8x128xbf16>
    %c0_44 = arith.constant 0 : index
    %c0_45 = arith.constant 0 : index
    %c0_46 = arith.constant 0 : index
    %c256 = arith.constant 256 : index
    %26 = vector.load %arg7[%c0_44, %c0_45, %c0_46, %c256] : memref<1x8x8x1152xbf16, #tpu.memory_space<vmem>>, vector<1x8x8x128xbf16>
    tpu.vector_store %arg7[%c0_44, %c0_45, %c0_46, %c256], %25 {strides = array<i32>} : memref<1x8x8x1152xbf16, #tpu.memory_space<vmem>>, vector<1x8x8x128xbf16>,
    %c0_47 = arith.constant 0 : index
    %c1_48 = arith.constant 1 : index
    %c0_49 = arith.constant 0 : index
    %c0_50 = arith.constant 0 : index
    %27 = vector.load %arg6[%c0_47, %c1_48, %c0_49, %c0_50] : memref<1x10x10x128xbf16, #tpu.memory_space<vmem>>, vector<1x8x8x128xbf16>
    %c0_51 = arith.constant 0 : index
    %c0_52 = arith.constant 0 : index
    %c0_53 = arith.constant 0 : index
    %c384 = arith.constant 384 : index
    %28 = vector.load %arg7[%c0_51, %c0_52, %c0_53, %c384] : memref<1x8x8x1152xbf16, #tpu.memory_space<vmem>>, vector<1x8x8x128xbf16>
    tpu.vector_store %arg7[%c0_51, %c0_52, %c0_53, %c384], %27 {strides = array<i32>} : memref<1x8x8x1152xbf16, #tpu.memory_space<vmem>>, vector<1x8x8x128xbf16>,
    %c0_54 = arith.constant 0 : index
    %c1_55 = arith.constant 1 : index
    %c1_56 = arith.constant 1 : index
    %c0_57 = arith.constant 0 : index
    %29 = vector.load %arg6[%c0_54, %c1_55, %c1_56, %c0_57] : memref<1x10x10x128xbf16, #tpu.memory_space<vmem>>, vector<1x8x8x128xbf16>
    %c0_58 = arith.constant 0 : index
    %c0_59 = arith.constant 0 : index
    %c0_60 = arith.constant 0 : index
    %c512 = arith.constant 512 : index
    %30 = vector.load %arg7[%c0_58, %c0_59, %c0_60, %c512] : memref<1x8x8x1152xbf16, #tpu.memory_space<vmem>>, vector<1x8x8x128xbf16>
    tpu.vector_store %arg7[%c0_58, %c0_59, %c0_60, %c512], %29 {strides = array<i32>} : memref<1x8x8x1152xbf16, #tpu.memory_space<vmem>>, vector<1x8x8x128xbf16>,
    %c0_61 = arith.constant 0 : index
    %c1_62 = arith.constant 1 : index
    %c2_63 = arith.constant 2 : index
    %c0_64 = arith.constant 0 : index
    %31 = vector.load %arg6[%c0_61, %c1_62, %c2_63, %c0_64] : memref<1x10x10x128xbf16, #tpu.memory_space<vmem>>, vector<1x8x8x128xbf16>
    %c0_65 = arith.constant 0 : index
    %c0_66 = arith.constant 0 : index
    %c0_67 = arith.constant 0 : index
    %c640 = arith.constant 640 : index
    %32 = vector.load %arg7[%c0_65, %c0_66, %c0_67, %c640] : memref<1x8x8x1152xbf16, #tpu.memory_space<vmem>>, vector<1x8x8x128xbf16>
    tpu.vector_store %arg7[%c0_65, %c0_66, %c0_67, %c640], %31 {strides = array<i32>} : memref<1x8x8x1152xbf16, #tpu.memory_space<vmem>>, vector<1x8x8x128xbf16>,
    %c0_68 = arith.constant 0 : index
    %c2_69 = arith.constant 2 : index
    %c0_70 = arith.constant 0 : index
    %c0_71 = arith.constant 0 : index
    %33 = vector.load %arg6[%c0_68, %c2_69, %c0_70, %c0_71] : memref<1x10x10x128xbf16, #tpu.memory_space<vmem>>, vector<1x8x8x128xbf16>
    %c0_72 = arith.constant 0 : index
    %c0_73 = arith.constant 0 : index
    %c0_74 = arith.constant 0 : index
    %c768 = arith.constant 768 : index
    %34 = vector.load %arg7[%c0_72, %c0_73, %c0_74, %c768] : memref<1x8x8x1152xbf16, #tpu.memory_space<vmem>>, vector<1x8x8x128xbf16>
    tpu.vector_store %arg7[%c0_72, %c0_73, %c0_74, %c768], %33 {strides = array<i32>} : memref<1x8x8x1152xbf16, #tpu.memory_space<vmem>>, vector<1x8x8x128xbf16>,
    %c0_75 = arith.constant 0 : index
    %c2_76 = arith.constant 2 : index
    %c1_77 = arith.constant 1 : index
    %c0_78 = arith.constant 0 : index
    %35 = vector.load %arg6[%c0_75, %c2_76, %c1_77, %c0_78] : memref<1x10x10x128xbf16, #tpu.memory_space<vmem>>, vector<1x8x8x128xbf16>
    %c0_79 = arith.constant 0 : index
    %c0_80 = arith.constant 0 : index
    %c0_81 = arith.constant 0 : index
    %c896 = arith.constant 896 : index
    %36 = vector.load %arg7[%c0_79, %c0_80, %c0_81, %c896] : memref<1x8x8x1152xbf16, #tpu.memory_space<vmem>>, vector<1x8x8x128xbf16>
    tpu.vector_store %arg7[%c0_79, %c0_80, %c0_81, %c896], %35 {strides = array<i32>} : memref<1x8x8x1152xbf16, #tpu.memory_space<vmem>>, vector<1x8x8x128xbf16>,
    %c0_82 = arith.constant 0 : index
    %c2_83 = arith.constant 2 : index
    %c2_84 = arith.constant 2 : index
    %c0_85 = arith.constant 0 : index
    %37 = vector.load %arg6[%c0_82, %c2_83, %c2_84, %c0_85] : memref<1x10x10x128xbf16, #tpu.memory_space<vmem>>, vector<1x8x8x128xbf16>
    %c0_86 = arith.constant 0 : index
    %c0_87 = arith.constant 0 : index
    %c0_88 = arith.constant 0 : index
    %c1024 = arith.constant 1024 : index
    %38 = vector.load %arg7[%c0_86, %c0_87, %c0_88, %c1024] : memref<1x8x8x1152xbf16, #tpu.memory_space<vmem>>, vector<1x8x8x128xbf16>
    tpu.vector_store %arg7[%c0_86, %c0_87, %c0_88, %c1024], %37 {strides = array<i32>} : memref<1x8x8x1152xbf16, #tpu.memory_space<vmem>>, vector<1x8x8x128xbf16>,
    %c0_89 = arith.constant 0 : index
    %c0_90 = arith.constant 0 : index
    %c0_91 = arith.constant 0 : index
    %c0_92 = arith.constant 0 : index
    %39 = vector.load %arg7[%c0_89, %c0_90, %c0_91, %c0_92] : memref<1x8x8x1152xbf16, #tpu.memory_space<vmem>>, vector<1x8x8x1152xbf16>
    %40 = vector.shape_cast %39 : vector<1x8x8x1152xbf16> to vector<64x1152xbf16>
    %c0_93 = arith.constant 0 : index
    %c0_94 = arith.constant 0 : index
    %41 = vector.load %arg3[%c0_93, %c0_94] : memref<1152x128xbf16, #tpu.memory_space<vmem>>, vector<1152x128xbf16>
    %cst_95 = arith.constant dense<0.000000e+00> : vector<64x128xf32>
    %42 = tpu.matmul %40, %41, %cst_95 {dimension_numbers = #tpu.dot_dimension_numbers<[1], [0], [0], [1], [0, 0, 1, 1], [], []>} : vector<64x1152xbf16>, vector<1152x128xbf16>, vector<64x128xf32> -> vector<64x128xf32>
    %43 = arith.addf %42, %11 : vector<64x128xf32>
    %44 = vector.broadcast %2 : vector<1x128xf32> to vector<64x128xf32>
    %45 = arith.addf %43, %44 : vector<64x128xf32>
    %cst_96 = arith.constant 0.000000e+00 : f32
    %46 = vector.broadcast %cst_96 : f32 to vector<64x128xf32>
    %47 = arith.maximumf %45, %46 : vector<64x128xf32>
    %c0_97 = arith.constant 0 : index
    %c0_98 = arith.constant 0 : index
    %48 = vector.load %arg5[%c0_97, %c0_98] : memref<64x128xf32, #tpu.memory_space<vmem>>, vector<64x128xf32>
    tpu.vector_store %arg5[%c0_97, %c0_98], %47 {strides = array<i32>} : memref<64x128xf32, #tpu.memory_space<vmem>>, vector<64x128xf32>,
    return
  }
  func.func @transform_0(%arg0: i32) -> (i32, i32) {
    %c0_i32 = arith.constant 0 : i32
    %c0_i32_0 = arith.constant 0 : i32
    return %arg0, %c0_i32 : i32, i32
  }
  func.func @transform_1(%arg0: i32) -> (i32, i32) {
    %c0_i32 = arith.constant 0 : i32
    %c0_i32_0 = arith.constant 0 : i32
    %c0_i32_1 = arith.constant 0 : i32
    return %c0_i32, %c0_i32_0 : i32, i32
  }
  func.func @transform_2(%arg0: i32) -> (i32, i32) {
    %c0_i32 = arith.constant 0 : i32
    %c0_i32_0 = arith.constant 0 : i32
    %c0_i32_1 = arith.constant 0 : i32
    return %c0_i32, %c0_i32_0 : i32, i32
  }
  func.func @transform_3(%arg0: i32) -> (i32, i32) {
    %c0_i32 = arith.constant 0 : i32
    %c0_i32_0 = arith.constant 0 : i32
    %c0_i32_1 = arith.constant 0 : i32
    return %c0_i32, %c0_i32_0 : i32, i32
  }
  func.func @transform_4(%arg0: i32) -> (i32, i32) {
    %c0_i32 = arith.constant 0 : i32
    %c0_i32_0 = arith.constant 0 : i32
    return %arg0, %c0_i32 : i32, i32
  }
}

</mosaic_0001>

<bundles_post_ra>
// kernel: tpu_custom_call.1
= control target key start
LH: loop header
LB: loop body
LE: loop exit
PB: predicated region body
PF: predicated region fallthrough
CT: control target
= control target key end

     0   :  { %9 = vsyncpa [#allocation5], 0  ;;  %s4035_s0 = inlined_call_operand.hbm [shape: bf16[128,128], index: 0, kind: input, shape index: {}]   ;;  %s4036_s1 = inlined_call_operand.hbm [shape: bf16[128,256], index: 1, kind: input, shape index: {}]   ;;  %s4037_s2 = inlined_call_operand.hbm [shape: bf16[1152,128], index: 2, kind: input, shape index: {}]   ;;  %s4038_s3 = inlined_call_operand.vmem [shape: f32[2,128], index: 3, kind: input, shape index: {}]   ;;  %s4039_s4 = inlined_call_operand.hbm [shape: f32[128,128], index: 4, kind: output, shape index: {}]  }
   0x1   :  { %11 = vsyncpa [#allocation5 + $0x1], 0 }
   0x2   :  { %12 = vsyncpa [#allocation8], 0 }
   0x3   :  { %13 = vsyncpa [#allocation6], 0 }
   0x4   :  { %15 = vsyncpa [#allocation6 + $0x1], 0  ;;  %s3555_s15 = smov 0   ;;  %s3557_s16 = smov 0  }
   0x5   :  { %s3559_s17 = smov 0   ;;  %s3561_s18 = smov 0  }
   0x6 LB: > { %s3576_s19 = sadd.s32 4294967295, %s3519_s18   ;;  %s2576_s20 = sadd.s32 4294967294, %s3519_s18   ;;  %s3519_s18 = sphi %s3561_s18, %s4059_s18   ;;  %s3515_s17 = sphi %s3559_s17, %s4058_s17   ;;  %s3511_s16 = sphi %s3557_s16, %s4057_s16   ;;  %s3507_s15 = sphi %s3555_s15, %s4056_s15  }
   0x7   : > { %p41_p0 = scmp.ne.s32.totalorder %s3511_s16, %s3507_s15  ;;  %p42_p1 = scmp.eq.s32.totalorder %s3576_s19, 0 }
   0x8   : > { %p128_p2 = scmp.eq.s32.totalorder %s3576_s19, 1  ;;  %p134_p3 = scmp.eq.s32.totalorder %s2576_s20, 1 }
   0x9   : > { %p3585_p4 = por %p42_p1, %p41_p0  ;;  %p2577_p5 = scmp.ge.s32.totalorder %s3519_s18, 1 }
   0xa   : > { %p3590_p6 = por %p134_p3, %p41_p0  ;;  %p141_p7 = scmp.lt.s32.totalorder %s3519_s18, 3 }
   0xb   : > { %s152_s25 = sshll.u32 %s4036_s1, 4  ;;  %s3521_s27 = smov [#allocation7]   ;;  %s153_s25 = int_to_ptr.hbm [resolvable:$true] %s152_s25 }
   0xc   : > { %p3598_p8 = pnand %p2577_p5, %p141_p7  ;;  %s154_s28 = sshll.u32 %s3521_s27, 4  ;;  %s155_s28 = int_to_ptr.vmem [resolvable:$true] %s154_s28 }
   0xd   : > { %s166_s5 = sshll.u32 %s4037_s2, 4  ;;  %s3522_s6 = smov 128   ;;  %s167_s5 = int_to_ptr.hbm [resolvable:$true] %s166_s5 }
   0xe   : > { %p3296_p9 = pneg %p3598_p8  ;;  %s3523_s7 = smov 8  }
   0xf   : > { %s3524_s8 = smov [#allocation9]   ;;  %s3525_s10 = smov 64  }
  0x10   : > { %p3297_p10 = pnand %p3296_p9, %p42_p1  ;;  %s168_s9 = sshll.u32 %s3524_s8, 4  ;;  %s169_s9 = int_to_ptr.vmem [resolvable:$true] %s168_s9 }
  0x11   : > { %s3526_s11 = smov 4   ;;  %s3614_s12 = sadd.s32 1, %s3519_s18  }
  0x12   : > { %3299 = dma.hbm_to_vmem [thread:$0]  (!%p3297_p10), %s153_s25, 2048, %s155_s28, [#allocation8], %s3522_s6, %s3522_s6, %s3523_s7  }
  0x13   : > { %3302 = dma.hbm_to_vmem [thread:$0]  (!%p3297_p10), %s167_s5, 9216, %s169_s9, [#allocation8], %s3525_s10, %s3525_s10, %s3526_s11  }
  0x14   : > { %s25_s13 = ssub.s32 %s3519_s18, %s3614_s12  ;;  %s28_s14 = sadd.s32 1, %s3515_s17 }
  0x15   : > { %p26_p12 = scmp.eq.s32.totalorder %s25_s13, 0  ;;  %p35_p13 = scmp.ne.s32.totalorder %s3515_s17, %s3511_s16 }
  0x16   : > { %p36_p0 = scmp.eq.s32.totalorder %s3519_s18, 0  ;;  %p3313_p7 = scmp.lt.s32.totalorder %s3519_s18, 2 }
  0x17   : > { %s3623_s20 = scalar_select %p26_p12, %s3515_s17, %s28_s14  }
  0x18   : > { %p37_p3 = por %p36_p0, %p35_p13  ;;  %p3627_p5 = por %p128_p2, %p35_p13 }
  0x19   : > { %s185_s24 = sand.u32 1, %s3515_s17   ;;  %s3130_s27 = sshll.u32 %s3519_s18, 5 }
  0x1a   : > { %s2581_s25 = sshll.u32 %s185_s24, 5  ;;  %s194_s30 = scalar_lea.hbm %s4035_s0, %s3130_s27 }
  0x1b   : > { %s189_s5 = scalar_lea.vmem [#allocation4], %s2581_s25  ;;  %s195_s7 = sshll.u32 %s194_s30, 4  ;;  %s196_s7 = int_to_ptr.hbm [resolvable:$true] %s195_s7 }
  0x1c   : > { %s197_s6 = sshll.u32 %s189_s5, 4  ;;  %p3637_p9 = pnand %p3313_p7, %p37_p3  ;;  %s198_s6 = int_to_ptr.vmem [resolvable:$true] %s197_s6 }
  0x1d   : > { %s186_s9 = scalar_lea.sflag [#allocation5], %s185_s24  ;;  %s3419_s13 = sshra.s32 %s196_s7, 4  ;;  %s3420_s13 = int_to_ptr.hbm [resolvable:$true] %s3419_s13 }
  0x1e   : > { %s3421_s14 = scalar_lea.hbm %s3420_s13, 32  ;;  %p3423_p10 = pneg %p3637_p9 }
  0x1f   : > { %p3422_p2 = scmp.ne.s32.totalorder %s3420_s13, %s3421_s14  ;;  %s3426_s28 = scalar_lea.hbm %s4035_s0, 64 }
  0x20   : > { %p3427_p0 = scmp.lt.s32.totalorder %s3420_s13, %s4035_s0  ;;  %p3428_p3 = scmp.lt.s32.totalorder %s3426_s28, %s3421_s14 }
  0x21   : > { %p3424_p12 = pnand %p3423_p10, %p3422_p2 }
  0x22   : > { %p3429_p7 = por %p3428_p3, %p3427_p0 }
  0x23   : > { %p3425_p13 = pneg %p3424_p12 }
  0x25   : > { %p3430_p11 = pnand %p3429_p7, %p3425_p13 }
  0x27   : > { %3433 = shalt.err (!%p3430_p11)
}
  0x28   : > { %3306 = dma.hbm_to_vmem [thread:$0]  (!%p3637_p9), %s196_s7, 512, %s198_s6, %s186_s9, %s3525_s10, %s3525_s10, %s3526_s11  }
  0x29   : > { %209 = sbr.rel (%p3598_p8) target bundleno = 556 (0x22c), region = 36  ;;  %s3657_s24 = sand.u32 (!%p3598_p8), 1, %s3511_s16  }
  0x2a   : > { %s2585_s5 = sshll.u32 (!%p3598_p8), %s3657_s24, 5  ;;  %s212_s13 = scalar_lea.sflag (!%p3598_p8), [#allocation5], %s3657_s24 }
  0x2b   : > { %s3661_s14 = scalar_lea.vmem (!%p3598_p8), [#allocation4], %s2585_s5 }
  0x2e   : > { %3494 = dma.done.wait (%p3585_p4), %s212_s13, 512  }
  0x2f   : > { %3496 = vsyncadd (%p3585_p4), %s212_s13, 4294966784 }
  0x30   : > { %3498 = dma.done.wait (%p42_p1), [#allocation8], 11264  }
  0x31   : > { %3500 = vsyncadd (%p42_p1), [#allocation8], 4294956032  ;;  %v2663_v0 = vld [vmem:[#allocation7 + $0x70] sm:$0xf]  ;;  %v3150_v1 = vld [vmem:[#allocation7 + $0x74] sm:$0xf0] }
  0x32   : > { %v2655_v2 = vld [vmem:[#allocation7 + $0x60] sm:$0xf]  ;;  %v2664_v3 = vor.u32 %v3150_v1, %v2663_v0  ;;  %v3148_v4 = vld [vmem:[#allocation7 + $0x64] sm:$0xf0]  ;;  %v2647_v6 = vld [vmem:[#allocation7 + $0x50] sm:$0xf] }
  0x33   : > { %v2656_v5 = vor.u32 %v3148_v4, %v2655_v2  ;;  %v3146_v7 = vld [vmem:[#allocation7 + $0x54] sm:$0xf0]  ;;  %v2639_v9 = vld [vmem:[#allocation7 + $0x40] sm:$0xf]  ;;  %v3144_v10 = vld [vmem:[#allocation7 + $0x44] sm:$0xf0] }
  0x34   : > { %383 = vmatpush.bf16.msra.mxu0 %v2664_v3  ;;  %3260 = vmatpush.bf16.msra.mxu3 %v2664_v3  ;;  %v2648_v8 = vor.u32 %v3146_v7, %v2647_v6  ;;  %v2640_v11 = vor.u32 %v3144_v10, %v2639_v9  ;;  %v2631_v12 = vld [vmem:[#allocation7 + $0x30] sm:$0xf]  ;;  %v3142_v13 = vld [vmem:[#allocation7 + $0x34] sm:$0xf0]  ;;  %v2623_v15 = vld [vmem:[#allocation7 + $0x20] sm:$0xf] }
  0x35   : > { %v2632_v14 = vor.u32 %v3142_v13, %v2631_v12  ;;  %v3140_v16 = vld [vmem:[#allocation7 + $0x24] sm:$0xf0]  ;;  %v3149_v17 = vld [vmem:[#allocation7 + $0x74] sm:$0xf]  ;;  %v2665_v18 = vld [vmem:[#allocation7 + $0x78] sm:$0xf0] }
  0x36   : > { %v2624_v19 = vor.u32 %v3140_v16, %v2623_v15  ;;  %v2668_v20 = vor.u32 %v3149_v17, %v2665_v18  ;;  %v3147_v21 = vld [vmem:[#allocation7 + $0x64] sm:$0xf]  ;;  %v2657_v22 = vld [vmem:[#allocation7 + $0x68] sm:$0xf0]  ;;  %v2615_v23 = vld [vmem:[#allocation7 + $0x10] sm:$0xf] }
  0x37   : > { %v3138_v24 = vld [vmem:[#allocation7 + $0x14] sm:$0xf0]  ;;  %v2660_v25 = vor.u32 %v3147_v21, %v2657_v22  ;;  %v3145_v26 = vld [vmem:[#allocation7 + $0x54] sm:$0xf]  ;;  %v2649_v27 = vld [vmem:[#allocation7 + $0x58] sm:$0xf0] }
  0x38   : > { %384 = vmatpush.bf16.msra.mxu0 %v2656_v5  ;;  %3261 = vmatpush.bf16.msra.mxu3 %v2656_v5  ;;  %v2616_v28 = vor.u32 %v3138_v24, %v2615_v23  ;;  %v2607_v29 = vld [vmem:[#allocation7] sm:$0xf]  ;;  %v3136_v30 = vld [vmem:[#allocation7 + $0x4] sm:$0xf0]  ;;  %v2652_v31 = vor.u32 %v3145_v26, %v2649_v27  ;;  %v3143_v32 = vld [vmem:[#allocation7 + $0x44] sm:$0xf] }
  0x39   : > { %412 = vmatpush.bf16.msra.mxu1 %v2668_v20  ;;  %v2641_v33 = vld [vmem:[#allocation7 + $0x48] sm:$0xf0]  ;;  %v2608_v34 = vor.u32 %v3136_v30, %v2607_v29  ;;  %v3131_v35 = vld [vmem:[%s3661_s14] sm:$0xff]  ;;  %v3133_v37 = vld [vmem:[%s3661_s14 + $0x10] sm:$0xff]  ;;  %vm464_vm0 = vcmask 1040384   ;;  %v3527_v10 = vmov 0  }
  0x3a   : > { %v2644_v36 = vor.u32 %v3143_v32, %v2641_v33  ;;  %v3141_v38 = vld [vmem:[#allocation7 + $0x34] sm:$0xf]  ;;  %v2633_v39 = vld [vmem:[#allocation7 + $0x38] sm:$0xf0]  ;;  %v3139_v41 = vld [vmem:[#allocation7 + $0x24] sm:$0xf] }
  0x3b   : > { %v2636_v40 = vor.u32 %v3141_v38, %v2633_v39  ;;  %v2625_v42 = vld [vmem:[#allocation7 + $0x28] sm:$0xf0]  ;;  %v3137_v44 = vld [vmem:[#allocation7 + $0x14] sm:$0xf]  ;;  %v2617_v45 = vld [vmem:[#allocation7 + $0x18] sm:$0xf0] }
  0x3c   : > { %385 = vmatpush.bf16.msra.mxu0 %v2648_v8  ;;  %3262 = vmatpush.bf16.msra.mxu3 %v2648_v8  ;;  %v2628_v43 = vor.u32 %v3139_v41, %v2625_v42  ;;  %v2620_v46 = vor.u32 %v3137_v44, %v2617_v45  ;;  %v3135_v47 = vld [vmem:[#allocation7 + $0x4] sm:$0xf]  ;;  %v2609_v48 = vld [vmem:[#allocation7 + $0x8] sm:$0xf0]  ;;  %v3134_v51 = vld [vmem:[%s3661_s14 + $0x18] sm:$0xff]  ;;  %vm850_vm5 = vcmask 1042432  }
  0x3d   : > { %413 = vmatpush.bf16.msra.mxu1 %v2660_v25  ;;  %v2612_v49 = vor.u32 %v3135_v47, %v2609_v48  ;;  %v3132_v50 = vld [vmem:[%s3661_s14 + $0x8] sm:$0xff]  ;;  %v3194_v52 = vld [vmem:[#allocation9 + $0x38] sm:$0xff]  ;;  %vm465_vm1 = vsmask.f32 256  ;;  %vm491_vm2 = vsmask.f32 7938 }
  0x3e   : > { %2182 = vmatpush.bf16.msra.mxu2 %v3194_v52  ;;  %vm3675_vm3 = vmand %vm464_vm0, %vm465_vm1  ;;  %v467_v54 = vld [vmem:[#allocation2 + $0x8] sm:$0x1]  ;;  %v493_v55 = vld [vmem:[#allocation2 + $0xc] sm:$0x1]  ;;  %458 = vst [vmem:[#allocation2] sm:$0xf] %v3527_v10 }
  0x3f   : > { %v468_v56 = vsel %vm3675_vm3, 0, %v467_v54  ;;  %vm3682_vm4 = vmand %vm464_vm0, %vm491_vm2  ;;  %v3210_v58 = vld [vmem:[#allocation9 + $0xb8] sm:$0xff]  ;;  %v3193_v59 = vld [vmem:[#allocation9 + $0x30] sm:$0xff]  ;;  %461 = vst [vmem:[#allocation2 + $0x48] sm:$0xf] %v3527_v10  ;;  %vm851_vm6 = vcmask 1046532  }
  0x40   : > { %386 = vmatpush.bf16.msra.mxu0 %v2640_v11  ;;  %3263 = vmatpush.bf16.msra.mxu3 %v2640_v11  ;;  %469 = vst [vmem:[#allocation2 + $0x8] sm:$0x1] %v468_v56  ;;  %v494_v60 = vsel %vm3682_vm4, 0, %v493_v55  ;;  %v3209_v61 = vld [vmem:[#allocation9 + $0xb0] sm:$0xff]  ;;  %v3192_v62 = vld [vmem:[#allocation9 + $0x28] sm:$0xff]  ;;  %v3218_v63 = vld [vmem:[#allocation9 + $0xf8] sm:$0xff] }
  0x41   : > { %414 = vmatpush.bf16.msra.mxu1 %v2652_v31  ;;  %495 = vst [vmem:[#allocation2 + $0xc] sm:$0x1] %v494_v60  ;;  %v3202_v0 = vld [vmem:[#allocation9 + $0x78] sm:$0xff]  ;;  %v3208_v1 = vld [vmem:[#allocation9 + $0xa8] sm:$0xff]  ;;  %v470_v2 = vld [vmem:[#allocation2 + $0x10] sm:$0x1] }
  0x42   : > { %2183 = vmatpush.bf16.msra.mxu2 %v3193_v59  ;;  %v471_v3 = vsel %vm3675_vm3, 0, %v470_v2  ;;  %v496_v4 = vld [vmem:[#allocation2 + $0x14] sm:$0x1]  ;;  %v3217_v7 = vld [vmem:[#allocation9 + $0xf0] sm:$0xff]  ;;  %v3190_v11 = vld [vmem:[#allocation9 + $0x18] sm:$0xff]  ;;  %vm605_vm8 = vcmask 1043456  }
  0x43   : > { %v3191_v5 = vld [vmem:[#allocation9 + $0x20] sm:$0xff]  ;;  %472 = vst [vmem:[#allocation2 + $0x10] sm:$0x1] %v471_v3  ;;  %v497_v6 = vsel %vm3682_vm4, 0, %v496_v4  ;;  %v3201_v8 = vld [vmem:[#allocation9 + $0x70] sm:$0xff]  ;;  %v3216_v12 = vld [vmem:[#allocation9 + $0xe8] sm:$0xff] }
  0x44   : > { %387 = vmatpush.bf16.msra.mxu0 %v2632_v14  ;;  %3264 = vmatpush.bf16.msra.mxu3 %v2632_v14  ;;  %498 = vst [vmem:[#allocation2 + $0x14] sm:$0x1] %v497_v6  ;;  %v3207_v9 = vld [vmem:[#allocation9 + $0xa0] sm:$0xff]  ;;  %v3200_v13 = vld [vmem:[#allocation9 + $0x68] sm:$0xff]  ;;  %v3206_v16 = vld [vmem:[#allocation9 + $0x98] sm:$0xff]  ;;  %s2588_s6 = sshll.u32 %s3657_s24, 6 }
  0x45   : > { %415 = vmatpush.bf16.msra.mxu1 %v2644_v36  ;;  %459 = vst [vmem:[#allocation2 + $0x4] sm:$0x1] %v3527_v10  ;;  %v473_v14 = vld [vmem:[#allocation2 + $0x18] sm:$0x1]  ;;  %v499_v15 = vld [vmem:[#allocation2 + $0x1c] sm:$0x1]  ;;  %vm3699_vm7 = vmor %vm850_vm5, %vm851_vm6 }
  0x46   : > { %2184 = vmatpush.bf16.msra.mxu2 %v3192_v62  ;;  %462 = vst [vmem:[#allocation2 + $0x4c] sm:$0x1] %v3527_v10  ;;  %v474_v17 = vsel %vm3675_vm3, 0, %v473_v14  ;;  %v500_v18 = vsel %vm3682_vm4, 0, %v499_v15  ;;  %v3215_v20 = vld [vmem:[#allocation9 + $0xe0] sm:$0xff]  ;;  %v3205_v23 = vld [vmem:[#allocation9 + $0x90] sm:$0xff]  ;;  %vm3727_vm11 = vmand %vm605_vm8, %vm491_vm2 }
  0x47   : > { %475 = vst [vmem:[#allocation2 + $0x18] sm:$0x1] %v474_v17  ;;  %v3199_v21 = vld [vmem:[#allocation9 + $0x60] sm:$0xff]  ;;  %v655_v22 = vld [vmem:[#allocation2] sm:$0xf]  ;;  %v3188_v25 = vld [vmem:[#allocation9 + $0x8] sm:$0xff] }
  0x48   : > { %388 = vmatpush.bf16.msra.mxu0 %v2624_v19  ;;  %3265 = vmatpush.bf16.msra.mxu3 %v2624_v19  ;;  %v3189_v19 = vld [vmem:[#allocation9 + $0x10] sm:$0xff]  ;;  %501 = vst [vmem:[#allocation2 + $0x1c] sm:$0x1] %v500_v18  ;;  %v3214_v26 = vld [vmem:[#allocation9 + $0xd8] sm:$0xff]  ;;  %v3204_v36 = vld [vmem:[#allocation9 + $0x88] sm:$0xff]  ;;  %s3971_s7 = scalar_lea.vmem [#allocation10], %s2588_s6 }
  0x49   : > { %416 = vmatpush.bf16.msra.mxu1 %v2636_v40  ;;  %663 = vst [vmem:[#allocation3] sm:$0xf] %v655_v22  ;;  %v818_v24 = vld [vmem:[#allocation2] sm:$0xe]  ;;  %v3198_v29 = vld [vmem:[#allocation9 + $0x58] sm:$0xff]  ;;  %v3203_v59 = vld [vmem:[#allocation9 + $0x80] sm:$0xff] }
  0x4a   : > { %2185 = vmatpush.bf16.msra.mxu2 %v3191_v5  ;;  %v671_v30 = vld [vmem:[#allocation2] sm:$0xf]  ;;  %v2669_v32 = vrot.slane %v818_v24, 9  ;;  %v502_v44 = vld [vmem:[#allocation2 + $0x24] sm:$0x1]  ;;  %v3212_v60 = vld [vmem:[#allocation9 + $0xc8] sm:$0xff] }
  0x4b   : > { %v476_v41 = vld [vmem:[#allocation2 + $0x20] sm:$0x1]  ;;  %v482_v54 = vld [vmem:[#allocation2 + $0x30] sm:$0x1]  ;;  %v485_v55 = vld [vmem:[#allocation2 + $0x38] sm:$0x1] }
  0x4c   : > { %389 = vmatpush.bf16.msra.mxu0 %v2616_v28  ;;  %3266 = vmatpush.bf16.msra.mxu3 %v2616_v28  ;;  %v819_v27 = vld [vmem:[#allocation2 + $0x4] sm:$0x1]  ;;  %v254_v28 = vld [vmem:[%s4038_s3] sm:$0x3]  ;;  %v477_v42 = vsel %vm3675_vm3, 0, %v476_v41  ;;  %v483_v56 = vsel %vm3675_vm3, 0, %v482_v54 }
  0x4d   : > { %417 = vmatpush.bf16.msra.mxu1 %v2628_v43  ;;  %v855_v33 = vrot.slane %v819_v27, 5  ;;  %v3703_v38 = vperm.slane %v254_v28, 0  ;;  %v3187_v43 = vld [vmem:[#allocation9] sm:$0xff]  ;;  %v3213_v45 = vld [vmem:[#allocation9 + $0xd0] sm:$0xff]  ;;  %478 = vst [vmem:[#allocation2 + $0x20] sm:$0x1] %v477_v42 }
  0x4e   : > { %2186 = vmatpush.bf16.msra.mxu2 %v3190_v11  ;;  %484 = vst [vmem:[#allocation2 + $0x30] sm:$0x1] %v483_v56  ;;  %v508_v62 = vld [vmem:[#allocation2 + $0x34] sm:$0x1]  ;;  %vm687_vm9 = vsmask.f32 3328 }
  0x4f   : > { %v856_v47 = vsel %vm3699_vm7, %v2669_v32, %v855_v33  ;;  %v3211_v6 = vld [vmem:[#allocation9 + $0xc0] sm:$0xff]  ;;  %vm688_vm10 = vsmask.f32 7440  ;;  %v607_v18 = vld [vmem:[#allocation2 + $0x8] sm:$0xf]  ;;  %v3225_v42 = vld [vmem:[#allocation9 + $0x130] sm:$0xff] }
  0x50   : > { %390 = vmatpush.bf16.msra.mxu0 %v2608_v34  ;;  %3267 = vmatpush.bf16.msra.mxu3 %v2608_v34  ;;  %v479_v34 = vld [vmem:[#allocation2 + $0x28] sm:$0x1]  ;;  %893 = vst [vmem:[#allocation3 + $0x8] sm:$0xf] %v856_v47  ;;  %v3195_v10 = vld [vmem:[#allocation9 + $0x40] sm:$0xff]  ;;  %vm3732_vm12 = vmor %vm687_vm9, %vm688_vm10  ;;  %s3259_s8 = sshll.u32 %s3576_s19, 6 }
  0x51   : > { %418 = vmatpush.bf16.msra.mxu1 %v2620_v46  ;;  %v480_v39 = vsel %vm3675_vm3, 0, %v479_v34  ;;  %v3197_v46 = vld [vmem:[#allocation9 + $0x50] sm:$0xff]  ;;  %v3226_v33 = vld [vmem:[#allocation9 + $0x138] sm:$0xff]  ;;  %s2480_s25 = scalar_lea.hbm %s4039_s4, %s3259_s8  ;;  %s2481_s28 = sshll.u32 %s3971_s7, 4  ;;  %s2482_s28 = int_to_ptr.vmem [resolvable:$true] %s2481_s28 }
  0x52   : > { %2187 = vmatpush.bf16.msra.mxu2 %v3189_v19  ;;  %481 = vst [vmem:[#allocation2 + $0x28] sm:$0x1] %v480_v39  ;;  %v610_v19 = vld [vmem:[#allocation2 + $0xc] sm:$0x1]  ;;  %s2483_s29 = sshll.u32 %s2480_s25, 4  ;;  %s2469_s19 = scalar_lea.sflag [#allocation6], %s3657_s24  ;;  %s2484_s29 = int_to_ptr.hbm [resolvable:$true] %s2483_s29 }
  0x53   : > { %391 = vmatmul.bf16.vlgmr.msra.gmra.mxu0 %v3131_v35  ;;  %401 = vmatmul.bf16.vlgmr.msra.gmra.mxu3 %v3133_v37  ;;  %s3463_s30 = sshra.s32 %s2484_s29, 4  ;;  %s3469_s21 = scalar_lea.hbm %s4039_s4, 128  ;;  %s3464_s30 = int_to_ptr.hbm [resolvable:$true] %s3463_s30 }
  0x54   : > { %2240 = vmatpush.bf16.msrb.mxu0 %v3210_v58  ;;  %2211 = vmatpush.bf16.msrb.mxu3 %v3202_v0  ;;  %v486_v58 = vsel %vm3675_vm3, 0, %v485_v55  ;;  %v509_v0 = vsel %vm3682_vm4, 0, %v508_v62  ;;  %v3224_v62 = vld [vmem:[#allocation9 + $0x128] sm:$0xff]  ;;  %s3465_s5 = scalar_lea.hbm %s3464_s30, 64  ;;  %p3470_p11 = scmp.lt.s32.totalorder %s3464_s30, %s4039_s4 }
  0x55   : > { %419 = vmatpush.bf16.msra.mxu1 %v2612_v49  ;;  %v503_v49 = vsel %vm3682_vm4, 0, %v502_v44  ;;  %487 = vst [vmem:[#allocation2 + $0x38] sm:$0x1] %v486_v58  ;;  %p3466_p1 = scmp.ne.s32.totalorder %s3464_s30, %s3465_s5  ;;  %p3471_p9 = scmp.lt.s32.totalorder %s3469_s21, %s3465_s5 }
  0x56   : > { %2188 = vmatpush.bf16.msra.mxu2 %v3188_v25  ;;  %504 = vst [vmem:[#allocation2 + $0x24] sm:$0x1] %v503_v49 }
  0x57   : > { %510 = vst [vmem:[#allocation2 + $0x34] sm:$0x1] %v509_v0  ;;  %p3467_p4 = pnand %p3466_p1, %p3627_p5  ;;  %p3472_p2 = por %p3471_p9, %p3470_p11 }
  0x58   : > { %420 = vmatmul.bf16.vlgmr.msra.gmra.mxu1 %v3131_v35  ;;  %2241 = vmatpush.bf16.msrb.mxu0 %v3209_v61  ;;  %v505_v35 = vld [vmem:[#allocation2 + $0x2c] sm:$0x1] }
  0x59   : > { %2269 = vmatpush.bf16.msrb.mxu1 %v3218_v63  ;;  %2212 = vmatpush.bf16.msrb.mxu3 %v3201_v8  ;;  %v506_v40 = vsel %vm3682_vm4, 0, %v505_v35  ;;  %v3196_v63 = vld [vmem:[#allocation9 + $0x48] sm:$0xff]  ;;  %v631_v35 = vld [vmem:[#allocation2 + $0x28] sm:$0xf]  ;;  %p3468_p8 = pneg %p3467_p4 }
  0x5a   : > { %507 = vst [vmem:[#allocation2 + $0x2c] sm:$0x1] %v506_v40  ;;  %2189 = vmatpush.bf16.msra.mxu2 %v3187_v43 }
  0x5b   : > { %p3473_p10 = pnand %p3472_p2, %p3468_p8 }
  0x5c   : > { %2242 = vmatpush.bf16.msrb.mxu0 %v3208_v1  ;;  %v511_v1 = vld [vmem:[#allocation2 + $0x3c] sm:$0x1] }
  0x5d   : > { %2270 = vmatpush.bf16.msrb.mxu1 %v3217_v7  ;;  %2213 = vmatpush.bf16.msrb.mxu3 %v3200_v13  ;;  %v512_v4 = vsel %vm3682_vm4, 0, %v511_v1  ;;  %v672_v13 = vld [vmem:[#allocation2 + $0x4] sm:$0x1] }
  0x5e   : > { %513 = vst [vmem:[#allocation2 + $0x3c] sm:$0x1] %v512_v4  ;;  %2298 = vmatpush.bf16.msrb.mxu2 %v3226_v33 }
  0x60   : > { %2243 = vmatpush.bf16.msrb.mxu0 %v3207_v9 }
  0x61   : > { %2271 = vmatpush.bf16.msrb.mxu1 %v3216_v12  ;;  %2214 = vmatpush.bf16.msrb.mxu3 %v3199_v21  ;;  %v700_v21 = vshll.u32 %v672_v13, 16  ;;  %v634_v44 = vld [vmem:[#allocation2 + $0x2c] sm:$0x1] }
  0x62   : > { %2299 = vmatpush.bf16.msrb.mxu2 %v3225_v42  ;;  %v2695_v42 = vld [vmem:[#allocation3] sm:$0xf] }
  0x63   : > { %396 = vmatmul.bf16.gmra.mxu0 %v3132_v50  ;;  %406 = vmatmul.bf16.gmra.mxu3 %v3134_v51  ;;  %v702_v27 = vrot.slane %v700_v21, 5 }
  0x64   : > { %2244 = vmatpush.bf16.msrb.mxu0 %v3206_v16 }
  0x65   : > { %2272 = vmatpush.bf16.msrb.mxu1 %v3215_v20  ;;  %2215 = vmatpush.bf16.msrb.mxu3 %v3198_v29 }
  0x66   : > { %2300 = vmatpush.bf16.msrb.mxu2 %v3224_v62 }
  0x68   : > { %425 = vmatmul.bf16.gmra.mxu1 %v3132_v50  ;;  %2245 = vmatpush.bf16.msrb.mxu0 %v3205_v23 }
  0x69   : > { %2273 = vmatpush.bf16.msrb.mxu1 %v3214_v26  ;;  %2216 = vmatpush.bf16.msrb.mxu3 %v3197_v46 }
  0x6c   : > { %2246 = vmatpush.bf16.msrb.mxu0 %v3204_v36 }
  0x6d   : > { %2274 = vmatpush.bf16.msrb.mxu1 %v3213_v45  ;;  %2217 = vmatpush.bf16.msrb.mxu3 %v3196_v63 }
  0x70   : > { %2247 = vmatpush.bf16.msrb.mxu0 %v3203_v59 }
  0x71   : > { %2275 = vmatpush.bf16.msrb.mxu1 %v3212_v60  ;;  %2218 = vmatpush.bf16.msrb.mxu3 %v3195_v10 }
  0x75   : > { %2276 = vmatpush.bf16.msrb.mxu1 %v3211_v6 }
  0x78   : > { %430 = vmatmul.bf16.gmra.mxu1 %v3133_v37  ;;  %v691_v37 = vshrl.u32 %v671_v30, 16 }
  0x7a   : > { %v693_v50 = vrot.slane %v691_v37, 4 }
  0x88   : > { %435 = vmatmul.bf16.gmra.mxu1 %v3134_v51  ;;  %v694_v51 = vshll.u32 %v671_v30, 16 }
  0x8a   : > { %v696_v2 = vrot.slane %v694_v51, 5  ;;  %v616_v51 = vld [vmem:[#allocation2 + $0x14] sm:$0x1] }
  0x8c   : > { %v697_v7 = vor.u32 %v696_v2, %v693_v50  ;;  %v613_v50 = vld [vmem:[#allocation2 + $0x10] sm:$0xf] }
  0x8e   : > { %v698_v20 = vrot.slane %v697_v7, 4 }
  0x90   : > { %v703_v37 = vsel %vm3732_vm12, %v698_v20, %v702_v27 }
  0x91   : > { %810 = vst [vmem:[#allocation3 + $0x4] sm:$0xf] %v703_v37 }
  0xd0   : > { %v392_v48 = vpop.f32.mrf.mxu0 }
  0xd1   : > { %v442_v52 = vadd.f32 %v3703_v38, %v392_v48 }
  0xd3   : > { %v450_v61 = vmax.f32 %v442_v52, 0.0 }
  0xd5   : > { %v517_v3 = vpack.c.bf16 %v450_v61, %v450_v61  ;;  %v488_v61 = vld [vmem:[#allocation2 + $0x40] sm:$0x1] }
  0xd6   : > { %v402_v5 = vpop.f32.mrf.mxu3 }
  0xd7   : > { %v526_v8 = vshrl.u32 %v517_v3, 16  ;;  %v446_v9 = vadd.f32 %v3703_v38, %v402_v5  ;;  %v529_v11 = vshll.u32 %v517_v3, 16 }
  0xd8   : > { %v394_v12 = vpop.f32.mrf.mxu0 }
  0xd9   : > { %v528_v14 = vrot.slane %v526_v8, 7  ;;  %v443_v15 = vadd.f32 %v3703_v38, %v394_v12  ;;  %v454_v16 = vmax.f32 %v446_v9, 0.0  ;;  %v637_v8 = vld [vmem:[#allocation2 + $0x30] sm:$0xf] }
  0xdb   : > { %v531_v22 = vor.u32 %v529_v11, %v528_v14  ;;  %v532_v23 = vrot.slane %v528_v14, 4  ;;  %v451_v24 = vmax.f32 %v443_v15, 0.0  ;;  %v521_v25 = vpack.c.bf16 %v454_v16, %v454_v16  ;;  %v640_v15 = vld [vmem:[#allocation2 + $0x34] sm:$0x1] }
  0xdd   : > { %v608_v28 = vsel %vm3727_vm11, %v531_v22, %v607_v18  ;;  %v611_v29 = vsel %vm3675_vm3, %v532_v23, %v610_v19  ;;  %v518_v30 = vpack.c.bf16 %v451_v24, %v451_v24  ;;  %v558_v32 = vshrl.u32 %v521_v25, 16  ;;  %v619_v18 = vld [vmem:[#allocation2 + $0x18] sm:$0xf]  ;;  %v622_v19 = vld [vmem:[#allocation2 + $0x1c] sm:$0x1] }
  0xde   : > { %609 = vst [vmem:[#allocation2 + $0x8] sm:$0xf] %v608_v28  ;;  %v561_v34 = vshll.u32 %v521_v25, 16  ;;  %v404_v36 = vpop.f32.mrf.mxu3  ;;  %v489_v24 = vsel %vm3675_vm3, 0, %v488_v61 }
  0xdf   : > { %612 = vst [vmem:[#allocation2 + $0xc] sm:$0x1] %v611_v29  ;;  %v534_v39 = vshrl.u32 %v518_v30, 16  ;;  %v560_v40 = vrot.slane %v558_v32, 7  ;;  %v447_v41 = vadd.f32 %v3703_v38, %v404_v36  ;;  %v537_v43 = vshll.u32 %v518_v30, 16  ;;  %v3223_v36 = vld [vmem:[#allocation9 + $0x120] sm:$0xff] }
  0xe0   : > { %v397_v45 = vpop.f32.mrf.mxu0  ;;  %490 = vst [vmem:[#allocation2 + $0x40] sm:$0x1] %v489_v24  ;;  %2301 = vmatpush.bf16.msrb.mxu2 %v3223_v36 }
  0xe1   : > { %v536_v46 = vrot.slane %v534_v39, 7  ;;  %v563_v47 = vor.u32 %v561_v34, %v560_v40  ;;  %v564_v48 = vrot.slane %v560_v40, 4  ;;  %v444_v49 = vadd.f32 %v3703_v38, %v397_v45 }
  0xe2   : > { %v455_v52 = vmax.f32 %v447_v41, 0.0 }
  0xe3   : > { %v539_v54 = vor.u32 %v537_v43, %v536_v46  ;;  %v540_v55 = vrot.slane %v536_v46, 4  ;;  %v632_v56 = vsel %vm3727_vm11, %v563_v47, %v631_v35  ;;  %v635_v58 = vsel %vm3675_vm3, %v564_v48, %v634_v44  ;;  %v514_v35 = vld [vmem:[#allocation2 + $0x44] sm:$0x1]  ;;  %v2703_v47 = vld [vmem:[#allocation3 + $0x8] sm:$0xf] }
  0xe4   : > { %633 = vst [vmem:[#allocation2 + $0x28] sm:$0xf] %v632_v56  ;;  %v452_v59 = vmax.f32 %v444_v49, 0.0  ;;  %v522_v60 = vpack.c.bf16 %v455_v52, %v455_v52  ;;  %v515_v61 = vsel %vm3682_vm4, 0, %v514_v35 }
  0xe5   : > { %v614_v63 = vsel %vm3727_vm11, %v539_v54, %v613_v50  ;;  %v617_v0 = vsel %vm3675_vm3, %v540_v55, %v616_v51  ;;  %636 = vst [vmem:[#allocation2 + $0x2c] sm:$0x1] %v635_v58  ;;  %v656_v1 = vld [vmem:[#allocation2 + $0x8] sm:$0xf]  ;;  %v643_v50 = vld [vmem:[#allocation2 + $0x38] sm:$0xf] }
  0xe6   : > { %v820_v2 = vld [vmem:[#allocation2 + $0x8] sm:$0xe]  ;;  %615 = vst [vmem:[#allocation2 + $0x10] sm:$0xf] %v614_v63  ;;  %v519_v3 = vpack.c.bf16 %v452_v59, %v452_v59  ;;  %v566_v4 = vshrl.u32 %v522_v60, 16  ;;  %v569_v5 = vshll.u32 %v522_v60, 16  ;;  %v407_v6 = vpop.f32.mrf.mxu3 }
  0xe7   : > { %v821_v7 = vld [vmem:[#allocation2 + $0xc] sm:$0x1]  ;;  %618 = vst [vmem:[#allocation2 + $0x14] sm:$0x1] %v617_v0  ;;  %v448_v9 = vadd.f32 %v3703_v38, %v407_v6  ;;  %v2670_v10 = vrot.slane %v820_v2, 9 }
  0xe8   : > { %v859_v11 = vrot.slane %v821_v7, 5  ;;  %v901_v12 = vld [vmem:[#allocation2 + $0x8] sm:$0xf]  ;;  %v542_v13 = vshrl.u32 %v519_v3, 16  ;;  %v568_v14 = vrot.slane %v566_v4, 7  ;;  %v399_v16 = vpop.f32.mrf.mxu0  ;;  %v545_v27 = vshll.u32 %v519_v3, 16 }
  0xe9   : > { %664 = vst [vmem:[#allocation3 + $0x24] sm:$0xf] %v656_v1  ;;  %v445_v20 = vadd.f32 %v3703_v38, %v399_v16  ;;  %v456_v21 = vmax.f32 %v448_v9, 0.0  ;;  %v673_v23 = vld [vmem:[#allocation2 + $0x8] sm:$0xf] }
  0xea   : > { %v860_v22 = vsel %vm3699_vm7, %v2670_v10, %v859_v11  ;;  %909 = vst [vmem:[#allocation3 + $0xc] sm:$0xf] %v901_v12  ;;  %v544_v25 = vrot.slane %v542_v13, 7  ;;  %v571_v28 = vor.u32 %v569_v5, %v568_v14  ;;  %v572_v29 = vrot.slane %v568_v14, 4  ;;  %v674_v43 = vld [vmem:[#allocation2 + $0xc] sm:$0x1] }
  0xeb   : > { %894 = vst [vmem:[#allocation3 + $0x2c] sm:$0xf] %v860_v22  ;;  %v453_v30 = vmax.f32 %v445_v20, 0.0  ;;  %v523_v32 = vpack.c.bf16 %v456_v21, %v456_v21  ;;  %v705_v33 = vshrl.u32 %v673_v23, 16  ;;  %v708_v34 = vshll.u32 %v673_v23, 16 }
  0xec   : > { %v547_v37 = vor.u32 %v545_v27, %v544_v25  ;;  %v548_v39 = vrot.slane %v544_v25, 4  ;;  %v638_v40 = vsel %vm3727_vm11, %v571_v28, %v637_v8  ;;  %v641_v41 = vsel %vm3675_vm3, %v572_v29, %v640_v15  ;;  %v646_v51 = vld [vmem:[#allocation2 + $0x3c] sm:$0x1]  ;;  %v625_v63 = vld [vmem:[#allocation2 + $0x20] sm:$0xf] }
  0xed   : > { %639 = vst [vmem:[#allocation2 + $0x30] sm:$0xf] %v638_v40  ;;  %v520_v44 = vpack.c.bf16 %v453_v30, %v453_v30  ;;  %v574_v45 = vshrl.u32 %v523_v32, 16  ;;  %v577_v46 = vshll.u32 %v523_v32, 16  ;;  %v902_v52 = vld [vmem:[#allocation2 + $0x10] sm:$0xf] }
  0xee   : > { %v620_v48 = vsel %vm3727_vm11, %v547_v37, %v619_v18  ;;  %v623_v49 = vsel %vm3675_vm3, %v548_v39, %v622_v19  ;;  %642 = vst [vmem:[#allocation2 + $0x34] sm:$0x1] %v641_v41  ;;  %v707_v54 = vrot.slane %v705_v33, 4  ;;  %v710_v55 = vrot.slane %v708_v34, 5  ;;  %v409_v56 = vpop.f32.mrf.mxu3  ;;  %v628_v0 = vld [vmem:[#allocation2 + $0x24] sm:$0x1] }
  0xef   : > { %621 = vst [vmem:[#allocation2 + $0x18] sm:$0xf] %v620_v48  ;;  %v550_v58 = vshrl.u32 %v520_v44, 16  ;;  %v576_v59 = vrot.slane %v574_v45, 7  ;;  %v714_v60 = vshll.u32 %v674_v43, 16  ;;  %v553_v62 = vshll.u32 %v520_v44, 16 }
  0xf0   : > { %624 = vst [vmem:[#allocation2 + $0x1c] sm:$0x1] %v623_v49  ;;  %v3155_v1 = vld [vmem:[#allocation3 + $0x20] sm:$0xf0]  ;;  %v711_v2 = vor.u32 %v710_v55, %v707_v54  ;;  %v449_v3 = vadd.f32 %v3703_v38, %v409_v56  ;;  %v822_v18 = vld [vmem:[#allocation2 + $0x10] sm:$0xe] }
  0xf1   : > { %v552_v4 = vrot.slane %v550_v58, 7  ;;  %v579_v5 = vor.u32 %v577_v46, %v576_v59  ;;  %v580_v6 = vrot.slane %v576_v59, 4  ;;  %v2696_v7 = vor.u32 %v3155_v1, %v2695_v42  ;;  %910 = vst [vmem:[#allocation3 + $0x30] sm:$0xf] %v902_v52  ;;  %v823_v19 = vld [vmem:[#allocation2 + $0x14] sm:$0x1] }
  0xf2   : > { %v3156_v8 = vld [vmem:[#allocation3 + $0x28] sm:$0xf0]  ;;  %v712_v10 = vrot.slane %v711_v2, 4  ;;  %v716_v11 = vrot.slane %v714_v60, 5  ;;  %v457_v12 = vmax.f32 %v449_v3, 0.0  ;;  %v2671_v22 = vrot.slane %v822_v18, 9 }
  0xf3   : > { %v2704_v9 = vor.u32 %v3156_v8, %v2703_v47  ;;  %516 = vst [vmem:[#allocation2 + $0x44] sm:$0x1] %v515_v61  ;;  %v555_v57 = vor.u32 %v553_v62, %v552_v4  ;;  %v556_v13 = vrot.slane %v552_v4, 4  ;;  %v644_v14 = vsel %vm3727_vm11, %v579_v5, %v643_v50  ;;  %2190 = vmatmul.bf16.vlgmr.msra.gmra.mxu2 %v2696_v7  ;;  %v3152_v24 = vld [vmem:[#allocation3 + $0xc] sm:$0xf]  ;;  %v3222_v54 = vld [vmem:[#allocation9 + $0x118] sm:$0xff] }
  0xf4   : > { %v647_v15 = vsel %vm3675_vm3, %v580_v6, %v646_v51  ;;  %645 = vst [vmem:[#allocation2 + $0x38] sm:$0xf] %v644_v14  ;;  %v717_v38 = vsel %vm3732_vm12, %v712_v10, %v716_v11  ;;  %v524_v16 = vpack.c.bf16 %v457_v12, %v457_v12  ;;  %v863_v23 = vrot.slane %v823_v19, 5  ;;  %v657_v28 = vld [vmem:[#allocation2 + $0x10] sm:$0xf]  ;;  %2302 = vmatpush.bf16.msrb.mxu2 %v3222_v54  ;;  %v3234_v5 = vld [vmem:[#allocation9 + $0x178] sm:$0xff] }
  0xf5   : > { %2248 = vmatmul.bf16.vlgmr.msrb.gmra.mxu0 %v2704_v9  ;;  %v626_v20 = vsel %vm3727_vm11, %v555_v57, %v625_v63  ;;  %v629_v21 = vsel %vm3675_vm3, %v556_v13, %v628_v0  ;;  %648 = vst [vmem:[#allocation2 + $0x3c] sm:$0x1] %v647_v15  ;;  %v649_v29 = vld [vmem:[#allocation2 + $0x40] sm:$0xf]  ;;  %v675_v33 = vld [vmem:[#allocation2 + $0x10] sm:$0xf]  ;;  %2327 = vmatpush.bf16.msra.mxu3 %v3234_v5 }
  0xf6   : > { %627 = vst [vmem:[#allocation2 + $0x20] sm:$0xf] %v626_v20  ;;  %v582_v25 = vshrl.u32 %v524_v16, 16  ;;  %v585_v27 = vshll.u32 %v524_v16, 16  ;;  %v658_v30 = vld [vmem:[#allocation2 + $0x18] sm:$0xf]  ;;  %v864_v36 = vsel %vm3699_vm7, %v2671_v22, %v863_v23 }
  0xf7   : > { %630 = vst [vmem:[#allocation2 + $0x24] sm:$0x1] %v629_v21  ;;  %v824_v32 = vld [vmem:[#allocation2 + $0x18] sm:$0xe]  ;;  %v825_v41 = vld [vmem:[#allocation2 + $0x1c] sm:$0x1] }
  0xf8   : > { %v2705_v34 = vld [vmem:[#allocation3 + $0x2c] sm:$0xf0]  ;;  %811 = vst [vmem:[#allocation3 + $0x28] sm:$0xf] %v717_v38  ;;  %v584_v35 = vrot.slane %v582_v25, 7  ;;  %v2672_v37 = vrot.slane %v824_v32, 9 }
  0xf9   : > { %v2708_v39 = vor.u32 %v3152_v24, %v2705_v34  ;;  %665 = vst [vmem:[#allocation3 + $0x48] sm:$0xf] %v657_v28  ;;  %v867_v44 = vrot.slane %v825_v41, 5  ;;  %v903_v45 = vld [vmem:[#allocation2 + $0x18] sm:$0xf]  ;;  %v719_v52 = vshrl.u32 %v675_v33, 16 }
  0xfa   : > { %v652_v40 = vld [vmem:[#allocation2 + $0x44] sm:$0x1]  ;;  %v587_v42 = vor.u32 %v585_v27, %v584_v35  ;;  %v588_v43 = vrot.slane %v584_v35, 4  ;;  %666 = vst [vmem:[#allocation3 + $0x6c] sm:$0xf] %v658_v30  ;;  %v722_v59 = vshll.u32 %v675_v33, 16 }
  0xfb   : > { %2277 = vmatmul.bf16.vlgmr.msrb.gmra.mxu1 %v2708_v39  ;;  %895 = vst [vmem:[#allocation3 + $0x50] sm:$0xf] %v864_v36  ;;  %v676_v46 = vld [vmem:[#allocation2 + $0x14] sm:$0x1]  ;;  %v677_v47 = vld [vmem:[#allocation2 + $0x18] sm:$0xf]  ;;  %v868_v50 = vsel %vm3699_vm7, %v2672_v37, %v867_v44 }
  0xfc   : > { %v650_v48 = vsel %vm3727_vm11, %v587_v42, %v649_v29  ;;  %v653_v49 = vsel %vm3675_vm3, %v588_v43, %v652_v40  ;;  %911 = vst [vmem:[#allocation3 + $0x54] sm:$0xf] %v903_v45  ;;  %v678_v51 = vld [vmem:[#allocation2 + $0x1c] sm:$0x1]  ;;  %v3151_v55 = vld [vmem:[#allocation3 + $0x4] sm:$0xf] }
  0xfd   : > { %651 = vst [vmem:[#allocation2 + $0x40] sm:$0xf] %v650_v48  ;;  %v904_v56 = vld [vmem:[#allocation2 + $0x20] sm:$0xf]  ;;  %v721_v58 = vrot.slane %v719_v52, 4  ;;  %v728_v60 = vshll.u32 %v676_v46, 16 }
  0xfe   : > { %654 = vst [vmem:[#allocation2 + $0x44] sm:$0x1] %v653_v49  ;;  %v733_v61 = vshrl.u32 %v677_v47, 16  ;;  %v736_v53 = vshll.u32 %v677_v47, 16  ;;  %v742_v62 = vshll.u32 %v678_v51, 16  ;;  %v724_v1 = vrot.slane %v722_v59, 5 }
  0xff   : > { %v2697_v17 = vld [vmem:[#allocation3 + $0x24] sm:$0xf0]  ;;  %896 = vst [vmem:[#allocation3 + $0x74] sm:$0xf] %v868_v50  ;;  %v659_v8 = vld [vmem:[#allocation2 + $0x20] sm:$0xf] }
 0x100   : > { %v2700_v63 = vor.u32 %v3151_v55, %v2697_v17  ;;  %v2731_v0 = vld [vmem:[#allocation3 + $0x48] sm:$0xf]  ;;  %912 = vst [vmem:[#allocation3 + $0x78] sm:$0xf] %v904_v56  ;;  %v735_v3 = vrot.slane %v733_v61, 4  ;;  %v738_v4 = vrot.slane %v736_v53, 5  ;;  %v725_v7 = vor.u32 %v724_v1, %v721_v58 }
 0x101   : > { %v3164_v2 = vld [vmem:[#allocation3 + $0x68] sm:$0xf0]  ;;  %v660_v9 = vld [vmem:[#allocation2 + $0x28] sm:$0xf]  ;;  %v730_v10 = vrot.slane %v728_v60, 5  ;;  %v744_v12 = vrot.slane %v742_v62, 5 }
 0x102   : > { %2219 = vmatmul.bf16.vlgmr.msrb.gmra.mxu3 %v2700_v63  ;;  %v2732_v6 = vor.u32 %v3164_v2, %v2731_v0  ;;  %v739_v11 = vor.u32 %v738_v4, %v735_v3  ;;  %667 = vst [vmem:[#allocation3 + $0x90] sm:$0xf] %v659_v8  ;;  %v826_v57 = vld [vmem:[#allocation2 + $0x20] sm:$0xe]  ;;  %v726_v14 = vrot.slane %v725_v7, 4  ;;  %v3242_v25 = vld [vmem:[#allocation9 + $0x1b8] sm:$0xff] }
 0x103   : > { %v2739_v13 = vld [vmem:[#allocation3 + $0x50] sm:$0xf]  ;;  %668 = vst [vmem:[#allocation3 + $0xb4] sm:$0xf] %v660_v9  ;;  %v827_v15 = vld [vmem:[#allocation2 + $0x24] sm:$0x1]  ;;  %2356 = vmatpush.bf16.msra.mxu0 %v3242_v25 }
 0x104   : > { %2195 = vmatmul.bf16.gmra.mxu2 %v2732_v6  ;;  %v2673_v38 = vrot.slane %v826_v57, 9  ;;  %v740_v16 = vrot.slane %v739_v11, 4  ;;  %v828_v18 = vld [vmem:[#allocation2 + $0x28] sm:$0xe]  ;;  %v829_v19 = vld [vmem:[#allocation2 + $0x2c] sm:$0x1]  ;;  %v731_v22 = vsel %vm3732_vm12, %v726_v14, %v730_v10 }
 0x105   : > { %v871_v20 = vrot.slane %v827_v15, 5  ;;  %v2674_v23 = vrot.slane %v828_v18, 9  ;;  %v875_v24 = vrot.slane %v829_v19, 5  ;;  %v3221_v27 = vld [vmem:[#allocation9 + $0x110] sm:$0xff]  ;;  %812 = vst [vmem:[#allocation3 + $0x4c] sm:$0xf] %v731_v22 }
 0x106   : > { %v3165_v21 = vld [vmem:[#allocation3 + $0x70] sm:$0xf0]  ;;  %v745_v32 = vsel %vm3732_vm12, %v740_v16, %v744_v12  ;;  %v905_v36 = vld [vmem:[#allocation2 + $0x28] sm:$0xf]  ;;  %2303 = vmatpush.bf16.msrb.mxu2 %v3221_v27  ;;  %v906_v40 = vld [vmem:[#allocation2 + $0x30] sm:$0xf] }
 0x107   : > { %v2740_v28 = vor.u32 %v3165_v21, %v2739_v13  ;;  %v3161_v29 = vld [vmem:[#allocation3 + $0x54] sm:$0xf]  ;;  %v2741_v30 = vld [vmem:[#allocation3 + $0x74] sm:$0xf0]  ;;  %v872_v33 = vsel %vm3699_vm7, %v2673_v38, %v871_v20  ;;  %813 = vst [vmem:[#allocation3 + $0x70] sm:$0xf] %v745_v32  ;;  %v876_v35 = vsel %vm3699_vm7, %v2674_v23, %v875_v24 }
 0x108   : > { %v2744_v34 = vor.u32 %v3161_v29, %v2741_v30  ;;  %v3233_v37 = vld [vmem:[#allocation9 + $0x170] sm:$0xff]  ;;  %897 = vst [vmem:[#allocation3 + $0x98] sm:$0xf] %v872_v33  ;;  %v681_v43 = vld [vmem:[#allocation2 + $0x28] sm:$0xf]  ;;  %v3240_v54 = vld [vmem:[#allocation9 + $0x1a8] sm:$0xff] }
 0x109   : > { %v3241_v39 = vld [vmem:[#allocation9 + $0x1b0] sm:$0xff]  ;;  %2253 = vmatmul.bf16.gmra.mxu0 %v2740_v28  ;;  %898 = vst [vmem:[#allocation3 + $0xbc] sm:$0xf] %v876_v35  ;;  %2328 = vmatpush.bf16.msra.mxu3 %v3233_v37  ;;  %v682_v44 = vld [vmem:[#allocation2 + $0x2c] sm:$0x1]  ;;  %v761_v50 = vshrl.u32 %v681_v43, 16 }
 0x10a   : > { %v679_v41 = vld [vmem:[#allocation2 + $0x20] sm:$0xf]  ;;  %v680_v42 = vld [vmem:[#allocation2 + $0x24] sm:$0x1]  ;;  %913 = vst [vmem:[#allocation3 + $0x9c] sm:$0xf] %v905_v36  ;;  %2357 = vmatpush.bf16.msra.mxu0 %v3241_v39 }
 0x10b   : > { %2282 = vmatmul.bf16.gmra.mxu1 %v2744_v34  ;;  %914 = vst [vmem:[#allocation3 + $0xc0] sm:$0xf] %v906_v40  ;;  %v747_v45 = vshrl.u32 %v679_v41, 16  ;;  %v750_v46 = vshll.u32 %v679_v41, 16  ;;  %v3795_v47 = vld [vmem:[#allocation9 + $0x1f8] sm:$0xff]  ;;  %v756_v49 = vshll.u32 %v680_v42, 16 }
 0x10c   : > { %v2767_v48 = vld [vmem:[#allocation3 + $0x90] sm:$0xf]  ;;  %v764_v51 = vshll.u32 %v681_v43, 16  ;;  %v770_v52 = vshll.u32 %v682_v44, 16  ;;  %v3220_v55 = vld [vmem:[#allocation9 + $0x108] sm:$0xff]  ;;  %3268 = vmatpush.bf16.msra.mxu1 %v3795_v47  ;;  %v763_v62 = vrot.slane %v761_v50, 4 }
 0x10d   : > { %v3173_v56 = vld [vmem:[#allocation3 + $0xb0] sm:$0xf0]  ;;  %v749_v58 = vrot.slane %v747_v45, 4  ;;  %v752_v59 = vrot.slane %v750_v46, 5  ;;  %v3232_v61 = vld [vmem:[#allocation9 + $0x168] sm:$0xff]  ;;  %2304 = vmatpush.bf16.msrb.mxu2 %v3220_v55  ;;  %v3239_v4 = vld [vmem:[#allocation9 + $0x1a0] sm:$0xff] }
 0x10e   : > { %v3798_v60 = vld [vmem:[#allocation9 + $0x1f0] sm:$0xff]  ;;  %v3160_v17 = vld [vmem:[#allocation3 + $0x4c] sm:$0xf]  ;;  %v766_v63 = vrot.slane %v764_v51, 5  ;;  %2358 = vmatpush.bf16.msra.mxu0 %v3240_v54  ;;  %v661_v2 = vld [vmem:[#allocation2 + $0x30] sm:$0xf]  ;;  %2329 = vmatpush.bf16.msra.mxu3 %v3232_v61  ;;  %v2768_v8 = vor.u32 %v3173_v56, %v2767_v48 }
 0x10f   : > { %v2733_v53 = vld [vmem:[#allocation3 + $0x6c] sm:$0xf0]  ;;  %v753_v1 = vor.u32 %v752_v59, %v749_v58  ;;  %v662_v3 = vld [vmem:[#allocation2 + $0x38] sm:$0xf]  ;;  %v758_v5 = vrot.slane %v756_v49, 5  ;;  %v772_v7 = vrot.slane %v770_v52, 5 }
 0x110   : > { %v2736_v0 = vor.u32 %v3160_v17, %v2733_v53  ;;  %v767_v6 = vor.u32 %v766_v63, %v763_v62  ;;  %669 = vst [vmem:[#allocation3 + $0xd8] sm:$0xf] %v661_v2  ;;  %v2775_v9 = vld [vmem:[#allocation3 + $0x98] sm:$0xf]  ;;  %v3174_v10 = vld [vmem:[#allocation3 + $0xb8] sm:$0xf0]  ;;  %3269 = vmatpush.bf16.msra.mxu1 %v3798_v60 }
 0x111   : > { %v754_v11 = vrot.slane %v753_v1, 4  ;;  %670 = vst [vmem:[#allocation3 + $0xfc] sm:$0xf] %v662_v3  ;;  %v3801_v12 = vld [vmem:[#allocation9 + $0x1e8] sm:$0xff]  ;;  %v830_v13 = vld [vmem:[#allocation2 + $0x30] sm:$0xe]  ;;  %v2776_v32 = vor.u32 %v3174_v10, %v2775_v9 }
 0x112   : > { %2224 = vmatmul.bf16.gmra.mxu3 %v2736_v0  ;;  %v768_v57 = vrot.slane %v767_v6, 4  ;;  %v3238_v14 = vld [vmem:[#allocation9 + $0x198] sm:$0xff]  ;;  %v3231_v15 = vld [vmem:[#allocation9 + $0x160] sm:$0xff]  ;;  %2359 = vmatpush.bf16.msra.mxu0 %v3239_v4  ;;  %v832_v20 = vld [vmem:[#allocation2 + $0x38] sm:$0xe]  ;;  %v2675_v23 = vrot.slane %v830_v13, 9 }
 0x113   : > { %v3170_v38 = vld [vmem:[#allocation3 + $0x9c] sm:$0xf]  ;;  %v2777_v16 = vld [vmem:[#allocation3 + $0xbc] sm:$0xf0]  ;;  %v759_v18 = vsel %vm3732_vm12, %v754_v11, %v758_v5  ;;  %v831_v19 = vld [vmem:[#allocation2 + $0x34] sm:$0x1]  ;;  %2330 = vmatpush.bf16.msra.mxu3 %v3231_v15 }
 0x114   : > { %2200 = vmatmul.bf16.gmra.mxu2 %v2768_v8  ;;  %v833_v21 = vld [vmem:[#allocation2 + $0x3c] sm:$0x1]  ;;  %v773_v22 = vsel %vm3732_vm12, %v768_v57, %v772_v7  ;;  %814 = vst [vmem:[#allocation3 + $0x94] sm:$0xf] %v759_v18  ;;  %v879_v24 = vrot.slane %v831_v19, 5  ;;  %v2676_v25 = vrot.slane %v832_v20, 9  ;;  %3270 = vmatpush.bf16.msra.mxu1 %v3801_v12  ;;  %v2780_v40 = vor.u32 %v3170_v38, %v2777_v16 }
 0x115   : > { %v3219_v27 = vld [vmem:[#allocation9 + $0x100] sm:$0xff]  ;;  %815 = vst [vmem:[#allocation3 + $0xb8] sm:$0xf] %v773_v22  ;;  %v883_v28 = vrot.slane %v833_v21, 5  ;;  %v907_v30 = vld [vmem:[#allocation2 + $0x38] sm:$0xf] }
 0x116   : > { %v3808_v29 = vld [vmem:[#allocation9 + $0x1e0] sm:$0xff]  ;;  %v880_v33 = vsel %vm3699_vm7, %v2675_v23, %v879_v24  ;;  %v908_v34 = vld [vmem:[#allocation2 + $0x40] sm:$0xf]  ;;  %915 = vst [vmem:[#allocation3 + $0xe4] sm:$0xf] %v907_v30  ;;  %2305 = vmatpush.bf16.msrb.mxu2 %v3219_v27  ;;  %2360 = vmatpush.bf16.msra.mxu0 %v3238_v14  ;;  %v3815_v50 = vld [vmem:[#allocation9 + $0x1d8] sm:$0xff] }
 0x117   : > { %v683_v35 = vld [vmem:[#allocation2 + $0x30] sm:$0xf]  ;;  %v884_v36 = vsel %vm3699_vm7, %v2676_v25, %v883_v28  ;;  %899 = vst [vmem:[#allocation3 + $0xe0] sm:$0xf] %v880_v33  ;;  %v3237_v37 = vld [vmem:[#allocation9 + $0x190] sm:$0xff]  ;;  %v3230_v51 = vld [vmem:[#allocation9 + $0x158] sm:$0xff] }
 0x118   : > { %v684_v39 = vld [vmem:[#allocation2 + $0x34] sm:$0x1]  ;;  %900 = vst [vmem:[#allocation3 + $0x104] sm:$0xf] %v884_v36  ;;  %v685_v41 = vld [vmem:[#allocation2 + $0x38] sm:$0xf]  ;;  %3271 = vmatpush.bf16.msra.mxu1 %v3808_v29  ;;  %2331 = vmatpush.bf16.msra.mxu3 %v3230_v51 }
 0x119   : > { %2258 = vmatmul.bf16.gmra.mxu0 %v2776_v32  ;;  %916 = vst [vmem:[#allocation3 + $0x108] sm:$0xf] %v908_v34  ;;  %v686_v42 = vld [vmem:[#allocation2 + $0x3c] sm:$0x1]  ;;  %v775_v43 = vshrl.u32 %v683_v35, 16  ;;  %v778_v44 = vshll.u32 %v683_v35, 16 }
 0x11a   : > { %v784_v45 = vshll.u32 %v684_v39, 16  ;;  %v789_v46 = vshrl.u32 %v685_v41, 16  ;;  %v792_v48 = vshll.u32 %v685_v41, 16  ;;  %v798_v49 = vshll.u32 %v686_v42, 16  ;;  %v3817_v52 = vld [vmem:[#allocation2 + $0x20] sm:$0xf]  ;;  %2361 = vmatpush.bf16.msra.mxu0 %v3237_v37 }
 0x11b   : > { %2287 = vmatmul.bf16.gmra.mxu1 %v2780_v40  ;;  %v2803_v54 = vld [vmem:[#allocation3 + $0xd8] sm:$0xf]  ;;  %v3182_v55 = vld [vmem:[#allocation3 + $0xf8] sm:$0xf0]  ;;  %v777_v56 = vrot.slane %v775_v43, 4  ;;  %v780_v58 = vrot.slane %v778_v44, 5 }
 0x11c   : > { %v3236_v59 = vld [vmem:[#allocation9 + $0x188] sm:$0xff]  ;;  %v3169_v61 = vld [vmem:[#allocation3 + $0x94] sm:$0xf]  ;;  %v2769_v17 = vld [vmem:[#allocation3 + $0xb4] sm:$0xf0]  ;;  %v791_v53 = vrot.slane %v789_v46, 4  ;;  %3272 = vmatpush.bf16.msra.mxu1 %v3815_v50  ;;  %v2804_v11 = vor.u32 %v3182_v55, %v2803_v54 }
 0x11d   : > { %v794_v62 = vrot.slane %v792_v48, 5  ;;  %v781_v63 = vor.u32 %v780_v58, %v777_v56  ;;  %v786_v0 = vrot.slane %v784_v45, 5  ;;  %v3820_v1 = vld [vmem:[#allocation9 + $0x1d0] sm:$0xff]  ;;  %v917_v3 = vld [vmem:[#allocation2 + $0x8] sm:$0xf]  ;;  %v800_v5 = vrot.slane %v798_v49, 5 }
 0x11e   : > { %v3229_v2 = vld [vmem:[#allocation9 + $0x150] sm:$0xff]  ;;  %v918_v6 = vld [vmem:[#allocation2 + $0xc] sm:$0x1]  ;;  %v919_v7 = vld [vmem:[#allocation2 + $0x10] sm:$0xf]  ;;  %v2772_v8 = vor.u32 %v3169_v61, %v2769_v17  ;;  %2362 = vmatpush.bf16.msra.mxu0 %v3236_v59  ;;  %v934_v10 = vshrl.u32 %v917_v3, 16 }
 0x11f   : > { %v795_v4 = vor.u32 %v794_v62, %v791_v53  ;;  %v782_v9 = vrot.slane %v781_v63, 4  ;;  %v2811_v57 = vld [vmem:[#allocation3 + $0xe0] sm:$0xf]  ;;  %v3183_v13 = vld [vmem:[#allocation3 + $0x100] sm:$0xf0]  ;;  %2332 = vmatpush.bf16.msra.mxu3 %v3229_v2  ;;  %v937_v16 = vshll.u32 %v917_v3, 16 }
 0x120   : > { %v3822_v14 = vld [vmem:[#allocation3 + $0xe4] sm:$0xf]  ;;  %v1203_v19 = vshrl.u32 %v3817_v52, 16  ;;  %3273 = vmatpush.bf16.msra.mxu1 %v3820_v1  ;;  %v936_v21 = vrot.slane %v934_v10, 4  ;;  %v943_v22 = vshll.u32 %v918_v6, 16  ;;  %v948_v23 = vshrl.u32 %v919_v7, 16 }
 0x121   : > { %v796_v15 = vrot.slane %v795_v4, 4  ;;  %v920_v38 = vld [vmem:[#allocation2 + $0x14] sm:$0x1]  ;;  %v787_v20 = vsel %vm3732_vm12, %v782_v9, %v786_v0  ;;  %v3258_v24 = vld [vmem:[#allocation9 + $0x238] sm:$0xff]  ;;  %v3828_v25 = vld [vmem:[#allocation9 + $0x1c8] sm:$0xff]  ;;  %v939_v33 = vrot.slane %v937_v16, 5  ;;  %v2812_v43 = vor.u32 %v3183_v13, %v2811_v57 }
 0x122   : > { %v3235_v18 = vld [vmem:[#allocation9 + $0x180] sm:$0xff]  ;;  %2229 = vmatmul.bf16.gmra.mxu3 %v2772_v8  ;;  %v3228_v27 = vld [vmem:[#allocation9 + $0x148] sm:$0xff]  ;;  %v1164_v28 = vld [vmem:[#allocation2 + $0x28] sm:$0xf]  ;;  %816 = vst [vmem:[#allocation3 + $0xdc] sm:$0xf] %v787_v20  ;;  %2414 = vmatpush.bf16.msra.mxu2 %v3258_v24 }
 0x123   : > { %v2813_v30 = vld [vmem:[#allocation3 + $0x104] sm:$0xf0]  ;;  %v801_v32 = vsel %vm3732_vm12, %v796_v15, %v800_v5  ;;  %v951_v34 = vshll.u32 %v919_v7, 16  ;;  %v950_v35 = vrot.slane %v948_v23, 4  ;;  %v957_v36 = vshll.u32 %v920_v38, 16  ;;  %2363 = vmatpush.bf16.msra.mxu0 %v3235_v18  ;;  %2333 = vmatpush.bf16.msra.mxu3 %v3228_v27  ;;  %v3227_v42 = vld [vmem:[#allocation9 + $0x140] sm:$0xff] }
 0x124   : > { %2205 = vmatmul.bf16.gmra.mxu2 %v2804_v11  ;;  %817 = vst [vmem:[#allocation3 + $0x100] sm:$0xf] %v801_v32  ;;  %v1142_v37 = vld [vmem:[#allocation2 + $0x10] sm:$0xf]  ;;  %v940_v39 = vor.u32 %v939_v33, %v936_v21  ;;  %v1143_v41 = vld [vmem:[#allocation2 + $0x18] sm:$0xf]  ;;  %v2816_v44 = vor.u32 %v3822_v14, %v2813_v30  ;;  %3274 = vmatpush.bf16.msra.mxu1 %v3828_v25 }
 0x125   : > { %v953_v40 = vrot.slane %v951_v34, 5  ;;  %1150 = vst [vmem:[#allocation3 + $0x18] sm:$0xf] %v1142_v37  ;;  %v945_v45 = vrot.slane %v943_v22, 5  ;;  %v3834_v46 = vld [vmem:[#allocation9 + $0x1c0] sm:$0xff]  ;;  %v1205_v55 = vrot.slane %v1203_v19, 4 }
 0x126   : > { %1151 = vst [vmem:[#allocation3 + $0x3c] sm:$0xf] %v1143_v41  ;;  %v1163_v48 = vld [vmem:[#allocation2 + $0x24] sm:$0x1]  ;;  %v941_v49 = vrot.slane %v940_v39, 4  ;;  %v1206_v56 = vshll.u32 %v3817_v52, 16 }
 0x127   : > { %2385 = vmatpush.bf16.msrb.mxu0 %v3795_v47  ;;  %v954_v51 = vor.u32 %v953_v40, %v950_v35  ;;  %v1165_v54 = vld [vmem:[#allocation2 + $0x2c] sm:$0x1]  ;;  %v3257_v58 = vld [vmem:[#allocation9 + $0x230] sm:$0xff]  ;;  %v1212_v59 = vshll.u32 %v1163_v48, 16  ;;  %v1217_v61 = vshrl.u32 %v1164_v28, 16  ;;  %v1220_v17 = vshll.u32 %v1164_v28, 16  ;;  %2334 = vmatpush.bf16.msra.mxu3 %v3227_v42 }
 0x128   : > { %v1226_v53 = vshll.u32 %v1165_v54, 16  ;;  %v1061_v62 = vld [vmem:[#allocation2 + $0x8] sm:$0xe]  ;;  %v946_v63 = vsel %vm3732_vm12, %v941_v49, %v945_v45  ;;  %v959_v2 = vrot.slane %v957_v36, 5  ;;  %v1208_v47 = vrot.slane %v1206_v56, 5  ;;  %v3256_v4 = vld [vmem:[#allocation9 + $0x228] sm:$0xff]  ;;  %3275 = vmatpush.bf16.msra.mxu1 %v3834_v46  ;;  %2415 = vmatpush.bf16.msra.mxu2 %v3257_v58 }
 0x129   : > { %2263 = vmatmul.bf16.gmra.mxu0 %v2812_v43  ;;  %v955_v0 = vrot.slane %v954_v51, 4  ;;  %v1062_v3 = vld [vmem:[#allocation2 + $0xc] sm:$0x1]  ;;  %1053 = vst [vmem:[#allocation3 + $0x10] sm:$0xf] %v946_v63  ;;  %v1219_v52 = vrot.slane %v1217_v61, 4 }
 0x12a   : > { %v3178_v5 = vld [vmem:[#allocation3 + $0xdc] sm:$0xf]  ;;  %v1222_v6 = vrot.slane %v1220_v17, 5  ;;  %v1209_v9 = vor.u32 %v1208_v47, %v1205_v55  ;;  %v1063_v10 = vld [vmem:[#allocation2 + $0x10] sm:$0xe]  ;;  %v2677_v11 = vrot.slane %v1061_v62, 9 }
 0x12b   : > { %2292 = vmatmul.bf16.gmra.mxu1 %v2816_v44  ;;  %v2805_v7 = vld [vmem:[#allocation3 + $0xfc] sm:$0xf0]  ;;  %v960_v8 = vsel %vm3732_vm12, %v955_v0, %v959_v2  ;;  %3276 = vmatpush.bf16.msrb.mxu3 %v3258_v24  ;;  %v1214_v57 = vrot.slane %v1212_v59, 5  ;;  %v1228_v14 = vrot.slane %v1226_v53, 5  ;;  %v1064_v15 = vld [vmem:[#allocation2 + $0x14] sm:$0x1] }
 0x12c   : > { %1054 = vst [vmem:[#allocation3 + $0x34] sm:$0xf] %v960_v8  ;;  %v1223_v13 = vor.u32 %v1222_v6, %v1219_v52  ;;  %2386 = vmatpush.bf16.msrb.mxu0 %v3798_v60  ;;  %v1210_v38 = vrot.slane %v1209_v9, 4  ;;  %v1095_v16 = vrot.slane %v1062_v3, 5  ;;  %v2678_v18 = vrot.slane %v1063_v10, 9  ;;  %2416 = vmatpush.bf16.msra.mxu2 %v3256_v4  ;;  %v3255_v27 = vld [vmem:[#allocation9 + $0x220] sm:$0xff]  ;;  %v3857_v10 = vpop.f32.mrf.mxu1 }
 0x12d   : > { %v1099_v19 = vrot.slane %v1064_v15, 5  ;;  %v2808_v20 = vor.u32 %v3178_v5, %v2805_v7  ;;  %v921_v22 = vld [vmem:[#allocation2 + $0x18] sm:$0xf]  ;;  %v922_v23 = vld [vmem:[#allocation2 + $0x1c] sm:$0x1]  ;;  %v3254_v9 = vld [vmem:[#allocation9 + $0x218] sm:$0xff] }
 0x12e   : > { %v1224_v21 = vrot.slane %v1223_v13, 4  ;;  %v1215_v24 = vsel %vm3732_vm12, %v1210_v38, %v1214_v57  ;;  %v1096_v28 = vsel %vm3699_vm7, %v2677_v11, %v1095_v16  ;;  %v923_v60 = vld [vmem:[#allocation2 + $0x20] sm:$0xf]  ;;  %v924_v32 = vld [vmem:[#allocation2 + $0x24] sm:$0x1]  ;;  %v962_v33 = vshrl.u32 %v921_v22, 16 }
 0x12f   : > { %v1100_v30 = vsel %vm3699_vm7, %v2678_v18, %v1099_v19  ;;  %3277 = vmatpush.bf16.msrb.mxu3 %v3257_v58  ;;  %1296 = vst [vmem:[#allocation3 + $0x64] sm:$0xf] %v1215_v24  ;;  %v965_v35 = vshll.u32 %v921_v22, 16  ;;  %v971_v36 = vshll.u32 %v922_v23, 16  ;;  %v976_v37 = vshrl.u32 %v923_v60, 16 }
 0x130   : > { %v1229_v34 = vsel %vm3732_vm12, %v1224_v21, %v1228_v14  ;;  %2387 = vmatpush.bf16.msrb.mxu0 %v3801_v12  ;;  %v2711_v39 = vld [vmem:[#allocation3 + $0x10] sm:$0xf]  ;;  %v964_v40 = vrot.slane %v962_v33, 4  ;;  %v979_v41 = vshll.u32 %v923_v60, 16  ;;  %v3158_v42 = vld [vmem:[#allocation3 + $0x38] sm:$0xf0]  ;;  %2417 = vmatpush.bf16.msra.mxu2 %v3255_v27 }
 0x131   : > { %1297 = vst [vmem:[#allocation3 + $0x88] sm:$0xf] %v1229_v34  ;;  %v967_v43 = vrot.slane %v965_v35, 5  ;;  %v978_v44 = vrot.slane %v976_v37, 4  ;;  %v985_v45 = vshll.u32 %v924_v32, 16  ;;  %v973_v56 = vrot.slane %v971_v36, 5 }
 0x132   : > { %2234 = vmatmul.bf16.gmra.mxu3 %v2808_v20  ;;  %1133 = vst [vmem:[#allocation3 + $0x14] sm:$0xf] %v1096_v28  ;;  %v981_v49 = vrot.slane %v979_v41, 5  ;;  %v2719_v54 = vld [vmem:[#allocation3 + $0x18] sm:$0xf]  ;;  %v3253_v32 = vld [vmem:[#allocation9 + $0x210] sm:$0xff] }
 0x133   : > { %v3157_v48 = vld [vmem:[#allocation3 + $0x30] sm:$0xf0]  ;;  %1134 = vst [vmem:[#allocation3 + $0x38] sm:$0xf] %v1100_v30  ;;  %3278 = vmatpush.bf16.msrb.mxu3 %v3256_v4  ;;  %v968_v55 = vor.u32 %v967_v43, %v964_v40  ;;  %v987_v12 = vrot.slane %v985_v45, 5  ;;  %v2720_v2 = vor.u32 %v3158_v42, %v2719_v54 }
 0x134   : > { %v2712_v51 = vor.u32 %v3157_v48, %v2711_v39  ;;  %v1144_v58 = vld [vmem:[#allocation2 + $0x20] sm:$0xf]  ;;  %v1145_v59 = vld [vmem:[#allocation2 + $0x28] sm:$0xf]  ;;  %2388 = vmatpush.bf16.msrb.mxu0 %v3808_v29  ;;  %v982_v61 = vor.u32 %v981_v49, %v978_v44  ;;  %v1166_v17 = vld [vmem:[#allocation2 + $0x30] sm:$0xf]  ;;  %2418 = vmatpush.bf16.msra.mxu2 %v3254_v9 }
 0x135   : > { %1152 = vst [vmem:[#allocation3 + $0x60] sm:$0xf] %v1144_v58  ;;  %v1167_v53 = vld [vmem:[#allocation2 + $0x34] sm:$0x1]  ;;  %v969_v62 = vrot.slane %v968_v55, 4  ;;  %v1231_v0 = vshrl.u32 %v1166_v17, 16 }
 0x136   : > { %2306 = vmatmul.bf16.vlgmr.msrb.gmra.mxu2 %v2712_v51  ;;  %1153 = vst [vmem:[#allocation3 + $0x84] sm:$0xf] %v1145_v59  ;;  %v1168_v63 = vld [vmem:[#allocation2 + $0x38] sm:$0xf]  ;;  %v3163_v47 = vld [vmem:[#allocation3 + $0x64] sm:$0xf] }
 0x137   : > { %v983_v3 = vrot.slane %v982_v61, 4  ;;  %v1169_v4 = vld [vmem:[#allocation2 + $0x3c] sm:$0x1]  ;;  %v1234_v5 = vshll.u32 %v1166_v17, 16  ;;  %3279 = vmatpush.bf16.msrb.mxu3 %v3255_v27  ;;  %v974_v6 = vsel %vm3732_vm12, %v969_v62, %v973_v56  ;;  %v1233_v29 = vrot.slane %v1231_v0, 4  ;;  %v3871_v61 = vpop.f32.mrf.mxu1 }
 0x138   : > { %v2757_v52 = vld [vmem:[#allocation3 + $0x84] sm:$0xf0]  ;;  %v1240_v7 = vshll.u32 %v1167_v53, 16  ;;  %v1245_v8 = vshrl.u32 %v1168_v63, 16  ;;  %2389 = vmatpush.bf16.msrb.mxu0 %v3815_v50  ;;  %1055 = vst [vmem:[#allocation3 + $0x58] sm:$0xf] %v974_v6  ;;  %2419 = vmatpush.bf16.msra.mxu2 %v3253_v32 }
 0x139   : > { %2364 = vmatmul.bf16.vlgmr.msra.gmra.mxu0 %v2720_v2  ;;  %v2760_v11 = vor.u32 %v3163_v47, %v2757_v52  ;;  %v988_v57 = vsel %vm3732_vm12, %v983_v3, %v987_v12  ;;  %v1236_v13 = vrot.slane %v1234_v5, 5  ;;  %v1248_v14 = vshll.u32 %v1168_v63, 16  ;;  %v1065_v20 = vld [vmem:[#allocation2 + $0x18] sm:$0xe]  ;;  %v1066_v50 = vld [vmem:[#allocation2 + $0x1c] sm:$0x1] }
 0x13a   : > { %1056 = vst [vmem:[#allocation3 + $0x7c] sm:$0xf] %v988_v57  ;;  %v1242_v15 = vrot.slane %v1240_v7, 5  ;;  %v1247_v38 = vrot.slane %v1245_v8, 4  ;;  %v1254_v19 = vshll.u32 %v1169_v4, 16  ;;  %v2679_v60 = vrot.slane %v1065_v20, 9 }
 0x13b   : > { %2398 = vmatmul.bf16.vlgmr.msra.gmra.mxu1 %v2760_v11  ;;  %v1237_v16 = vor.u32 %v1236_v13, %v1233_v29  ;;  %v1250_v18 = vrot.slane %v1248_v14, 5  ;;  %3280 = vmatpush.bf16.msrb.mxu3 %v3254_v9  ;;  %v1067_v21 = vld [vmem:[#allocation2 + $0x20] sm:$0xe]  ;;  %v1068_v22 = vld [vmem:[#allocation2 + $0x24] sm:$0x1]  ;;  %v1103_v33 = vrot.slane %v1066_v50, 5 }
 0x13c   : > { %2390 = vmatpush.bf16.msrb.mxu0 %v3820_v1  ;;  %v3153_v23 = vld [vmem:[#allocation3 + $0x14] sm:$0xf]  ;;  %v2713_v27 = vld [vmem:[#allocation3 + $0x34] sm:$0xf0]  ;;  %v1256_v30 = vrot.slane %v1254_v19, 5  ;;  %v2680_v34 = vrot.slane %v1067_v21, 9 }
 0x13d   : > { %v1238_v24 = vrot.slane %v1237_v16, 4  ;;  %v1251_v28 = vor.u32 %v1250_v18, %v1247_v38  ;;  %v1107_v35 = vrot.slane %v1068_v22, 5  ;;  %v925_v36 = vld [vmem:[#allocation2 + $0x28] sm:$0xf]  ;;  %v926_v40 = vld [vmem:[#allocation2 + $0x2c] sm:$0x1]  ;;  %v2716_v1 = vor.u32 %v3153_v23, %v2713_v27 }
 0x13e   : > { %v927_v41 = vld [vmem:[#allocation2 + $0x30] sm:$0xf]  ;;  %v990_v42 = vshrl.u32 %v925_v36, 16  ;;  %v1104_v43 = vsel %vm3699_vm7, %v2679_v60, %v1103_v33  ;;  %v928_v45 = vld [vmem:[#allocation2 + $0x34] sm:$0x1]  ;;  %v993_v55 = vshll.u32 %v925_v36, 16 }
 0x13f   : > { %v1243_v37 = vsel %vm3732_vm12, %v1238_v24, %v1242_v15  ;;  %v1252_v39 = vrot.slane %v1251_v28, 4  ;;  %3281 = vmatpush.bf16.msrb.mxu3 %v3253_v32  ;;  %v1108_v44 = vsel %vm3699_vm7, %v2680_v34, %v1107_v35  ;;  %v2747_v48 = vld [vmem:[#allocation3 + $0x58] sm:$0xf]  ;;  %1135 = vst [vmem:[#allocation3 + $0x5c] sm:$0xf] %v1104_v43  ;;  %v999_v12 = vshll.u32 %v926_v40, 16 }
 0x140   : > { %1298 = vst [vmem:[#allocation3 + $0xac] sm:$0xf] %v1243_v37  ;;  %2391 = vmatpush.bf16.msrb.mxu0 %v3828_v25  ;;  %v992_v54 = vrot.slane %v990_v42, 4  ;;  %v2755_v56 = vld [vmem:[#allocation3 + $0x60] sm:$0xf]  ;;  %v1004_v58 = vshrl.u32 %v927_v41, 16  ;;  %v3878_v37 = vpop.f32.mrf.mxu1 }
 0x141   : > { %v3166_v49 = vld [vmem:[#allocation3 + $0x78] sm:$0xf0]  ;;  %v1257_v51 = vsel %vm3732_vm12, %v1252_v39, %v1256_v30  ;;  %v1007_v59 = vshll.u32 %v927_v41, 16  ;;  %1136 = vst [vmem:[#allocation3 + $0x80] sm:$0xf] %v1108_v44  ;;  %v995_v17 = vrot.slane %v993_v55, 5 }
 0x142   : > { %2335 = vmatmul.bf16.vlgmr.msra.gmra.mxu3 %v2716_v1  ;;  %1299 = vst [vmem:[#allocation3 + $0xd0] sm:$0xf] %v1257_v51  ;;  %v1013_v53 = vshll.u32 %v928_v45, 16  ;;  %v1146_v25 = vld [vmem:[#allocation2 + $0x30] sm:$0xf]  ;;  %v2748_v62 = vor.u32 %v3166_v49, %v2747_v48  ;;  %v1006_v0 = vrot.slane %v1004_v58, 4 }
 0x143   : > { %v3167_v63 = vld [vmem:[#allocation3 + $0x80] sm:$0xf0]  ;;  %v1009_v2 = vrot.slane %v1007_v59, 5  ;;  %v1147_v47 = vld [vmem:[#allocation2 + $0x38] sm:$0xf]  ;;  %v996_v3 = vor.u32 %v995_v17, %v992_v54  ;;  %v1001_v4 = vrot.slane %v999_v12, 5 }
 0x144   : > { %2392 = vmatpush.bf16.msrb.mxu0 %v3834_v46  ;;  %v1015_v5 = vrot.slane %v1013_v53, 5  ;;  %1154 = vst [vmem:[#allocation3 + $0xa8] sm:$0xf] %v1146_v25  ;;  %v1170_v52 = vld [vmem:[#allocation2 + $0x40] sm:$0xf]  ;;  %v2756_v8 = vor.u32 %v3167_v63, %v2755_v56  ;;  %v3252_v21 = vld [vmem:[#allocation9 + $0x208] sm:$0xff] }
 0x145   : > { %v1010_v6 = vor.u32 %v1009_v2, %v1006_v0  ;;  %1155 = vst [vmem:[#allocation3 + $0xcc] sm:$0xf] %v1147_v47  ;;  %v1171_v29 = vld [vmem:[#allocation2 + $0x44] sm:$0x1]  ;;  %v1172_v7 = vld [vmem:[#allocation2 + $0x48] sm:$0xf]  ;;  %2420 = vmatpush.bf16.msra.mxu2 %v3252_v21  ;;  %3282 = vmatpush.bf16.msrb.mxu3 %v3252_v21 }
 0x146   : > { %2311 = vmatmul.bf16.gmra.mxu2 %v2748_v62  ;;  %v997_v11 = vrot.slane %v996_v3, 4  ;;  %v1173_v57 = vld [vmem:[#allocation2 + $0x4c] sm:$0x1]  ;;  %v1259_v13 = vshrl.u32 %v1170_v52, 16  ;;  %v1262_v15 = vshll.u32 %v1170_v52, 16  ;;  %v1268_v38 = vshll.u32 %v1171_v29, 16 }
 0x147   : > { %v3172_v9 = vld [vmem:[#allocation3 + $0xac] sm:$0xf]  ;;  %v1011_v14 = vrot.slane %v1010_v6, 4  ;;  %v1273_v16 = vshrl.u32 %v1172_v7, 16  ;;  %v1276_v20 = vshll.u32 %v1172_v7, 16  ;;  %v1282_v50 = vshll.u32 %v1173_v57, 16 }
 0x148   : > { %v1002_v18 = vsel %vm3732_vm12, %v997_v11, %v1001_v4  ;;  %v1261_v19 = vrot.slane %v1259_v13, 4  ;;  %v2749_v23 = vld [vmem:[#allocation3 + $0x7c] sm:$0xf0]  ;;  %v1264_v24 = vrot.slane %v1262_v15, 5  ;;  %v3162_v28 = vld [vmem:[#allocation3 + $0x5c] sm:$0xf] }
 0x149   : > { %2369 = vmatmul.bf16.gmra.mxu0 %v2756_v8  ;;  %v2793_v46 = vld [vmem:[#allocation3 + $0xcc] sm:$0xf0]  ;;  %v1016_v27 = vsel %vm3732_vm12, %v1011_v14, %v1015_v5  ;;  %1057 = vst [vmem:[#allocation3 + $0xa0] sm:$0xf] %v1002_v18  ;;  %v1275_v30 = vrot.slane %v1273_v16, 4  ;;  %v1278_v60 = vrot.slane %v1276_v20, 5  ;;  %v2752_v1 = vor.u32 %v3162_v28, %v2749_v23  ;;  %v3891_v20 = vpop.f32.mrf.mxu1 }
 0x14a   : > { %v2796_v22 = vor.u32 %v3172_v9, %v2793_v46  ;;  %1058 = vst [vmem:[#allocation3 + $0xc4] sm:$0xf] %v1016_v27  ;;  %v3251_v32 = vld [vmem:[#allocation9 + $0x200] sm:$0xff]  ;;  %v1265_v33 = vor.u32 %v1264_v24, %v1261_v19  ;;  %v1270_v34 = vrot.slane %v1268_v38, 5  ;;  %v1069_v35 = vld [vmem:[#allocation2 + $0x28] sm:$0xe] }
 0x14b   : > { %v1070_v36 = vld [vmem:[#allocation2 + $0x2c] sm:$0x1]  ;;  %v1279_v39 = vor.u32 %v1278_v60, %v1275_v30  ;;  %v1284_v40 = vrot.slane %v1282_v50, 5  ;;  %v1071_v41 = vld [vmem:[#allocation2 + $0x30] sm:$0xe]  ;;  %v2681_v44 = vrot.slane %v1069_v35, 9  ;;  %2421 = vmatpush.bf16.msra.mxu2 %v3251_v32  ;;  %3283 = vmatpush.bf16.msrb.mxu3 %v3251_v32 }
 0x14c   : > { %2403 = vmatmul.bf16.gmra.mxu1 %v2796_v22  ;;  %v1072_v42 = vld [vmem:[#allocation2 + $0x34] sm:$0x1]  ;;  %v1266_v43 = vrot.slane %v1265_v33, 4  ;;  %v1111_v45 = vrot.slane %v1070_v36, 5  ;;  %v929_v48 = vld [vmem:[#allocation2 + $0x38] sm:$0xf] }
 0x14d   : > { %v1280_v49 = vrot.slane %v1279_v39, 4  ;;  %v2682_v51 = vrot.slane %v1071_v41, 9  ;;  %v1115_v54 = vrot.slane %v1072_v42, 5  ;;  %v930_v55 = vld [vmem:[#allocation2 + $0x3c] sm:$0x1]  ;;  %v1018_v56 = vshrl.u32 %v929_v48, 16 }
 0x14e   : > { %v3880_v12 = vld [vmem:[#allocation2 + $0x10] sm:$0xf]  ;;  %v1271_v58 = vsel %vm3732_vm12, %v1266_v43, %v1270_v34  ;;  %v1112_v59 = vsel %vm3699_vm7, %v2681_v44, %v1111_v45  ;;  %v931_v17 = vld [vmem:[#allocation2 + $0x40] sm:$0xf]  ;;  %v932_v53 = vld [vmem:[#allocation2 + $0x44] sm:$0x1] }
 0x14f   : > { %v1021_v25 = vshll.u32 %v929_v48, 16  ;;  %v1027_v62 = vshll.u32 %v930_v55, 16  ;;  %v1285_v0 = vsel %vm3732_vm12, %v1280_v49, %v1284_v40  ;;  %1300 = vst [vmem:[#allocation3 + $0xf4] sm:$0xf] %v1271_v58  ;;  %v1116_v2 = vsel %vm3699_vm7, %v2682_v51, %v1115_v54  ;;  %v2791_v5 = vld [vmem:[#allocation3 + $0xa8] sm:$0xf] }
 0x150   : > { %v2783_v63 = vld [vmem:[#allocation3 + $0xa0] sm:$0xf]  ;;  %v1020_v47 = vrot.slane %v1018_v56, 4  ;;  %v1032_v3 = vshrl.u32 %v931_v17, 16  ;;  %v3176_v52 = vld [vmem:[#allocation3 + $0xc8] sm:$0xf0] }
 0x151   : > { %v3175_v4 = vld [vmem:[#allocation3 + $0xc0] sm:$0xf0]  ;;  %1301 = vst [vmem:[#allocation3 + $0x118] sm:$0xf] %v1285_v0  ;;  %v1023_v6 = vrot.slane %v1021_v25, 5  ;;  %v1029_v29 = vrot.slane %v1027_v62, 5  ;;  %v2792_v50 = vor.u32 %v3176_v52, %v2791_v5 }
 0x152   : > { %2340 = vmatmul.bf16.gmra.mxu3 %v2752_v1  ;;  %1137 = vst [vmem:[#allocation3 + $0xa4] sm:$0xf] %v1112_v59  ;;  %v1034_v7 = vrot.slane %v1032_v3, 4  ;;  %v1035_v8 = vshll.u32 %v931_v17, 16  ;;  %v1041_v9 = vshll.u32 %v932_v53, 16  ;;  %v2784_v11 = vor.u32 %v3175_v4, %v2783_v63 }
 0x153   : > { %1138 = vst [vmem:[#allocation3 + $0xc8] sm:$0xf] %v1116_v2  ;;  %v1024_v57 = vor.u32 %v1023_v6, %v1020_v47  ;;  %v1148_v13 = vld [vmem:[#allocation2 + $0x40] sm:$0xf]  ;;  %v1149_v14 = vld [vmem:[#allocation2 + $0x48] sm:$0xf]  ;;  %v3906_v6 = vpop.f32.mrf.mxu1 }
 0x154   : > { %v1037_v15 = vrot.slane %v1035_v8, 5  ;;  %1156 = vst [vmem:[#allocation3 + $0xf0] sm:$0xf] %v1148_v13  ;;  %v1073_v38 = vld [vmem:[#allocation2 + $0x38] sm:$0xe]  ;;  %v1175_v16 = vshrl.u32 %v3880_v12, 16 }
 0x155   : > { %v1025_v46 = vrot.slane %v1024_v57, 4  ;;  %1157 = vst [vmem:[#allocation3 + $0x114] sm:$0xf] %v1149_v14  ;;  %v1074_v18 = vld [vmem:[#allocation2 + $0x3c] sm:$0x1]  ;;  %v2683_v19 = vrot.slane %v1073_v38, 9 }
 0x156   : > { %2316 = vmatmul.bf16.gmra.mxu2 %v2784_v11  ;;  %v1038_v21 = vor.u32 %v1037_v15, %v1034_v7  ;;  %v1043_v22 = vrot.slane %v1041_v9, 5  ;;  %v1075_v23 = vld [vmem:[#allocation2 + $0x40] sm:$0xe]  ;;  %v1076_v27 = vld [vmem:[#allocation2 + $0x44] sm:$0x1]  ;;  %v1119_v24 = vrot.slane %v1074_v18, 5 }
 0x157   : > { %v3181_v28 = vld [vmem:[#allocation3 + $0xf4] sm:$0xf]  ;;  %v1030_v30 = vsel %vm3732_vm12, %v1025_v46, %v1029_v29  ;;  %v2684_v60 = vrot.slane %v1075_v23, 9  ;;  %v1123_v32 = vrot.slane %v1076_v27, 5  ;;  %v1302_v33 = vld [vmem:[#allocation2 + $0x10] sm:$0xe] }
 0x158   : > { %v2829_v34 = vld [vmem:[#allocation3 + $0x114] sm:$0xf0]  ;;  %v1039_v35 = vrot.slane %v1038_v21, 4  ;;  %1059 = vst [vmem:[#allocation3 + $0xe8] sm:$0xf] %v1030_v30  ;;  %v1120_v36 = vsel %vm3699_vm7, %v2683_v19, %v1119_v24  ;;  %v1178_v39 = vshll.u32 %v3880_v12, 16 }
 0x159   : > { %2374 = vmatmul.bf16.gmra.mxu0 %v2792_v50  ;;  %v1160_v40 = vld [vmem:[#allocation2 + $0x18] sm:$0xf]  ;;  %v2832_v41 = vor.u32 %v3181_v28, %v2829_v34  ;;  %v1124_v42 = vsel %vm3699_vm7, %v2684_v60, %v1123_v32  ;;  %1139 = vst [vmem:[#allocation3 + $0xec] sm:$0xf] %v1120_v36  ;;  %v1303_v1 = vld [vmem:[#allocation2 + $0x14] sm:$0x1] }
 0x15a   : > { %v1044_v43 = vsel %vm3732_vm12, %v1039_v35, %v1043_v22  ;;  %1140 = vst [vmem:[#allocation3 + $0x110] sm:$0xf] %v1124_v42  ;;  %v1304_v44 = vld [vmem:[#allocation2 + $0x18] sm:$0xe]  ;;  %v2685_v45 = vrot.slane %v1302_v33, 9  ;;  %v1177_v48 = vrot.slane %v1175_v16, 4 }
 0x15b   : > { %v3171_v49 = vld [vmem:[#allocation3 + $0xa4] sm:$0xf]  ;;  %1060 = vst [vmem:[#allocation3 + $0x10c] sm:$0xf] %v1044_v43  ;;  %v1305_v51 = vld [vmem:[#allocation2 + $0x1c] sm:$0x1] }
 0x15c   : > { %2408 = vmatmul.bf16.gmra.mxu1 %v2832_v41  ;;  %v2785_v54 = vld [vmem:[#allocation3 + $0xc4] sm:$0xf0]  ;;  %v1336_v55 = vrot.slane %v1303_v1, 5  ;;  %v2686_v56 = vrot.slane %v1304_v44, 9  ;;  %v1340_v12 = vrot.slane %v1305_v51, 5  ;;  %v1180_v58 = vrot.slane %v1178_v39, 5 }
 0x15d   : > { %v1159_v59 = vld [vmem:[#allocation2 + $0x14] sm:$0x1]  ;;  %v1189_v17 = vshrl.u32 %v1160_v40, 16  ;;  %v1192_v53 = vshll.u32 %v1160_v40, 16  ;;  %v1161_v63 = vld [vmem:[#allocation2 + $0x1c] sm:$0x1]  ;;  %v2788_v3 = vor.u32 %v3171_v49, %v2785_v54  ;;  %v3920_v49 = vpop.f32.mrf.mxu1 }
 0x15e   : > { %v1337_v25 = vsel %vm3699_vm7, %v2685_v45, %v1336_v55  ;;  %v1341_v62 = vsel %vm3699_vm7, %v2686_v56, %v1340_v12  ;;  %v1181_v0 = vor.u32 %v1180_v58, %v1177_v48  ;;  %v1184_v2 = vshll.u32 %v1159_v59, 16  ;;  %v1314_v47 = vld [vmem:[#allocation2 + $0x40] sm:$0xe]  ;;  %v1315_v52 = vld [vmem:[#allocation2 + $0x44] sm:$0x1] }
 0x15f   : > { %1374 = vst [vmem:[#allocation3 + $0x20] sm:$0xf] %v1337_v25  ;;  %v1191_v4 = vrot.slane %v1189_v17, 4  ;;  %v1194_v5 = vrot.slane %v1192_v53, 5  ;;  %v2819_v29 = vld [vmem:[#allocation3 + $0xe8] sm:$0xf] }
 0x160   : > { %1375 = vst [vmem:[#allocation3 + $0x44] sm:$0xf] %v1341_v62  ;;  %v1182_v7 = vrot.slane %v1181_v0, 4  ;;  %v1186_v8 = vrot.slane %v1184_v2, 5  ;;  %v2827_v9 = vld [vmem:[#allocation3 + $0xf0] sm:$0xf] }
 0x161   : > { %v3185_v11 = vld [vmem:[#allocation3 + $0x110] sm:$0xf0]  ;;  %v1195_v57 = vor.u32 %v1194_v5, %v1191_v4  ;;  %v1198_v13 = vshll.u32 %v1161_v63, 16  ;;  %v1316_v14 = vld [vmem:[#allocation2 + $0x48] sm:$0xe]  ;;  %v2691_v15 = vrot.slane %v1314_v47, 9 }
 0x162   : > { %2345 = vmatmul.bf16.gmra.mxu3 %v2788_v3  ;;  %v3184_v38 = vld [vmem:[#allocation3 + $0x108] sm:$0xf0]  ;;  %v1187_v16 = vsel %vm3732_vm12, %v1182_v7, %v1186_v8  ;;  %v1317_v46 = vld [vmem:[#allocation2 + $0x4c] sm:$0x1]  ;;  %v1360_v18 = vrot.slane %v1315_v52, 5  ;;  %v2692_v19 = vrot.slane %v1316_v14, 9  ;;  %v2828_v36 = vor.u32 %v3185_v11, %v2827_v9 }
 0x163   : > { %v2820_v50 = vor.u32 %v3184_v38, %v2819_v29  ;;  %v1196_v21 = vrot.slane %v1195_v57, 4  ;;  %v1200_v22 = vrot.slane %v1198_v13, 5  ;;  %1294 = vst [vmem:[#allocation3 + $0x1c] sm:$0xf] %v1187_v16  ;;  %v1364_v23 = vrot.slane %v1317_v46, 5 }
 0x164   : > { %v1361_v27 = vsel %vm3699_vm7, %v2691_v15, %v1360_v18  ;;  %v1306_v24 = vld [vmem:[#allocation2 + $0x20] sm:$0xe]  ;;  %v1307_v28 = vld [vmem:[#allocation2 + $0x24] sm:$0x1]  ;;  %v1308_v30 = vld [vmem:[#allocation2 + $0x28] sm:$0xe] }
 0x165   : > { %v1201_v60 = vsel %vm3732_vm12, %v1196_v21, %v1200_v22  ;;  %v1365_v32 = vsel %vm3699_vm7, %v2692_v19, %v1364_v23  ;;  %1380 = vst [vmem:[#allocation3 + $0xf8] sm:$0xf] %v1361_v27  ;;  %v1309_v33 = vld [vmem:[#allocation2 + $0x2c] sm:$0x1]  ;;  %v2687_v34 = vrot.slane %v1306_v24, 9  ;;  %v1344_v35 = vrot.slane %v1307_v28, 5  ;;  %v3926_v0 = vpop.f32.mrf.mxu1 }
 0x166   : > { %2321 = vmatmul.bf16.gmra.mxu2 %v2820_v50  ;;  %1295 = vst [vmem:[#allocation3 + $0x40] sm:$0xf] %v1201_v60  ;;  %v2688_v39 = vrot.slane %v1308_v30, 9  ;;  %v1348_v40 = vrot.slane %v1309_v33, 5  ;;  %v1310_v42 = vld [vmem:[#allocation2 + $0x30] sm:$0xe] }
 0x167   : > { %1381 = vst [vmem:[#allocation3 + $0x11c] sm:$0xf] %v1365_v32  ;;  %v1345_v41 = vsel %vm3699_vm7, %v2687_v34, %v1344_v35  ;;  %v1311_v1 = vld [vmem:[#allocation2 + $0x34] sm:$0x1]  ;;  %v1312_v43 = vld [vmem:[#allocation2 + $0x38] sm:$0xe] }
 0x168   : > { %v1349_v26 = vsel %vm3699_vm7, %v2688_v39, %v1348_v40  ;;  %1376 = vst [vmem:[#allocation3 + $0x68] sm:$0xf] %v1345_v41  ;;  %v1313_v44 = vld [vmem:[#allocation2 + $0x3c] sm:$0x1]  ;;  %v2689_v45 = vrot.slane %v1310_v42, 9  ;;  %v1352_v48 = vrot.slane %v1311_v1, 5 }
 0x169   : > { %2379 = vmatmul.bf16.gmra.mxu0 %v2828_v36  ;;  %1377 = vst [vmem:[#allocation3 + $0x8c] sm:$0xf] %v1349_v26  ;;  %v2690_v51 = vrot.slane %v1312_v43, 9  ;;  %v1356_v54 = vrot.slane %v1313_v44, 5  ;;  %v3180_v56 = vld [vmem:[#allocation3 + $0xec] sm:$0xf] }
 0x16a   : > { %v1353_v55 = vsel %vm3699_vm7, %v2689_v45, %v1352_v48  ;;  %v2821_v12 = vld [vmem:[#allocation3 + $0x10c] sm:$0xf0]  ;;  %v3159_v17 = vld [vmem:[#allocation3 + $0x40] sm:$0xf0]  ;;  %v2727_v25 = vld [vmem:[#allocation3 + $0x20] sm:$0xf] }
 0x16b   : > { %v1357_v58 = vsel %vm3699_vm7, %v2690_v51, %v1356_v54  ;;  %1378 = vst [vmem:[#allocation3 + $0xb0] sm:$0xf] %v1353_v55  ;;  %v2824_v59 = vor.u32 %v3180_v56, %v2821_v12  ;;  %v2728_v62 = vor.u32 %v3159_v17, %v2727_v25  ;;  %v3154_v47 = vld [vmem:[#allocation3 + $0x1c] sm:$0xf] }
 0x16c   : > { %1379 = vst [vmem:[#allocation3 + $0xd4] sm:$0xf] %v1357_v58  ;;  %v2835_v5 = vld [vmem:[#allocation3 + $0xf8] sm:$0xf] }
 0x16d   : > { %v2721_v63 = vld [vmem:[#allocation3 + $0x3c] sm:$0xf0]  ;;  %v438_v29 = vpop.f32.mrf.mxu1 }
 0x16e   : > { %v2724_v3 = vor.u32 %v3154_v47, %v2721_v63  ;;  %v3186_v31 = vld [vmem:[#allocation3 + $0x118] sm:$0xf0] }
 0x16f   : > { %v2836_v7 = vor.u32 %v3186_v31, %v2835_v5  ;;  %v2763_v8 = vld [vmem:[#allocation3 + $0x68] sm:$0xf] }
 0x170   : > { %v3168_v9 = vld [vmem:[#allocation3 + $0x88] sm:$0xf0] }
 0x171   : > { %v2764_v57 = vor.u32 %v3168_v9, %v2763_v8 }
 0x172   : > { %2350 = vmatmul.bf16.gmra.mxu3 %v2824_v59  ;;  %v2249_v53 = vpop.f32.mrf.mxu0  ;;  %v2799_v27 = vld [vmem:[#allocation3 + $0xb0] sm:$0xf] }
 0x173   : > { %v3177_v24 = vld [vmem:[#allocation3 + $0xd0] sm:$0xf0] }
 0x174   : > { %v2800_v30 = vor.u32 %v3177_v24, %v2799_v27 }
 0x176   : > { %2422 = vmatmul.bf16.vlgmr.msra.gmra.mxu2 %v2728_v62  ;;  %v2191_v2 = vpop.f32.mrf.mxu2 }
 0x177   : > { %v2192_v11 = vadd.f32 %v2191_v2, %v3857_v10 }
 0x178   : > { %v2278_v46 = vpop.f32.mrf.mxu1 }
 0x179   : > { %2393 = vmatmul.bf16.vlgmr.msrb.gmra.mxu0 %v2724_v3 }
 0x17a   : > { %v2251_v4 = vpop.f32.mrf.mxu0 }
 0x17e   : > { %v2193_v52 = vpop.f32.mrf.mxu2 }
 0x17f   : > { %v2194_v18 = vadd.f32 %v2193_v52, %v3871_v61 }
 0x180   : > { %v2280_v28 = vpop.f32.mrf.mxu1 }
 0x182   : > { %2437 = vmatmul.bf16.vlgmr.msrb.gmra.mxu3 %v2836_v7 }
 0x185   : > { %v2220_v13 = vpop.f32.mrf.mxu3 }
 0x186   : > { %v2221_v14 = vadd.f32 %v2220_v13, %v2192_v11  ;;  %v2254_v15 = vpop.f32.mrf.mxu0  ;;  %2427 = vmatmul.bf16.gmra.mxu2 %v2764_v57 }
 0x187   : > { %v2196_v38 = vpop.f32.mrf.mxu2 }
 0x188   : > { %v2250_v16 = vadd.f32 %v2249_v53, %v2221_v14  ;;  %v2197_v10 = vadd.f32 %v2196_v38, %v3878_v37  ;;  %v2283_v39 = vpop.f32.mrf.mxu1 }
 0x18a   : > { %v2279_v36 = vadd.f32 %v2278_v46, %v2250_v16 }
 0x18d   : > { %v2222_v19 = vpop.f32.mrf.mxu3 }
 0x18e   : > { %v2223_v50 = vadd.f32 %v2222_v19, %v2194_v18  ;;  %v2256_v21 = vpop.f32.mrf.mxu0 }
 0x18f   : > { %v2198_v22 = vpop.f32.mrf.mxu2 }
 0x190   : > { %v2252_v23 = vadd.f32 %v2251_v4, %v2223_v50  ;;  %v2199_v61 = vadd.f32 %v2198_v22, %v3891_v20  ;;  %v2285_v54 = vpop.f32.mrf.mxu1 }
 0x192   : > { %v2281_v43 = vadd.f32 %v2280_v28, %v2252_v23 }
 0x195   : > { %v2225_v60 = vpop.f32.mrf.mxu3 }
 0x196   : > { %v2226_v32 = vadd.f32 %v2225_v60, %v2197_v10  ;;  %v2259_v33 = vpop.f32.mrf.mxu0  ;;  %2432 = vmatmul.bf16.gmra.mxu2 %v2800_v30 }
 0x197   : > { %v2201_v34 = vpop.f32.mrf.mxu2 }
 0x198   : > { %v2255_v35 = vadd.f32 %v2254_v15, %v2226_v32  ;;  %v2202_v44 = vadd.f32 %v2201_v34, %v3906_v6  ;;  %v2288_v63 = vpop.f32.mrf.mxu1 }
 0x19a   : > { %v3933_v51 = vadd.f32 %v2283_v39, %v2255_v35 }
 0x19d   : > { %v2227_v40 = vpop.f32.mrf.mxu3 }
 0x19e   : > { %v2228_v41 = vadd.f32 %v2227_v40, %v2199_v61  ;;  %v2261_v42 = vpop.f32.mrf.mxu0 }
 0x19f   : > { %v2203_v26 = vpop.f32.mrf.mxu2 }
 0x1a0   : > { %v2257_v1 = vadd.f32 %v2256_v21, %v2228_v41  ;;  %v2204_v12 = vadd.f32 %v2203_v26, %v3920_v49  ;;  %v2290_v52 = vpop.f32.mrf.mxu1 }
 0x1a2   : > { %v3936_v17 = vadd.f32 %v2285_v54, %v2257_v1 }
 0x1a5   : > { %v2230_v37 = vpop.f32.mrf.mxu3 }
 0x1a6   : > { %v2231_v45 = vadd.f32 %v2230_v37, %v2202_v44  ;;  %v2264_v48 = vpop.f32.mrf.mxu0  ;;  %v3358_v37 = vld [vmem:[%s4038_s3] sm:$0x3] }
 0x1a7   : > { %v2206_v55 = vpop.f32.mrf.mxu2 }
 0x1a8   : > { %v2260_v56 = vadd.f32 %v2259_v33, %v2231_v45  ;;  %v2207_v6 = vadd.f32 %v2206_v55, %v3926_v0  ;;  %v2293_v13 = vpop.f32.mrf.mxu1  ;;  %v3966_v45 = vperm.slane %v3358_v37, 1 }
 0x1aa   : > { %v3939_v5 = vadd.f32 %v2288_v63, %v2260_v56 }
 0x1ad   : > { %v2232_v20 = vpop.f32.mrf.mxu3 }
 0x1ae   : > { %v2233_v58 = vadd.f32 %v2232_v20, %v2204_v12  ;;  %v2266_v59 = vpop.f32.mrf.mxu0 }
 0x1af   : > { %v2208_v53 = vpop.f32.mrf.mxu2 }
 0x1b0   : > { %v2262_v25 = vadd.f32 %v2261_v42, %v2233_v58  ;;  %v2209_v62 = vadd.f32 %v2208_v53, %v438_v29  ;;  %v2295_v16 = vpop.f32.mrf.mxu1 }
 0x1b2   : > { %v3941_v11 = vadd.f32 %v2290_v52, %v2262_v25 }
 0x1b5   : > { %v2235_v2 = vpop.f32.mrf.mxu3 }
 0x1b6   : > { %v2236_v47 = vadd.f32 %v2235_v2, %v2207_v6  ;;  %v2365_v3 = vpop.f32.mrf.mxu0 }
 0x1b8   : > { %v2265_v4 = vadd.f32 %v2264_v48, %v2236_v47  ;;  %v2399_v50 = vpop.f32.mrf.mxu1 }
 0x1b9   : > { %v2307_v31 = vpop.f32.mrf.mxu2 }
 0x1ba   : > { %v2308_v34 = vadd.f32 %v2307_v31, %v2279_v36  ;;  %v2294_v44 = vadd.f32 %v2293_v13, %v2265_v4 }
 0x1bd   : > { %v2237_v49 = vpop.f32.mrf.mxu3 }
 0x1be   : > { %v2238_v7 = vadd.f32 %v2237_v49, %v2209_v62  ;;  %v2367_v8 = vpop.f32.mrf.mxu0 }
 0x1c0   : > { %v2267_v9 = vadd.f32 %v2266_v59, %v2238_v7  ;;  %v3953_v24 = vpop.f32.mrf.mxu1 }
 0x1c1   : > { %v2309_v57 = vpop.f32.mrf.mxu2 }
 0x1c2   : > { %v2310_v42 = vadd.f32 %v2309_v57, %v2281_v43  ;;  %v2296_v63 = vadd.f32 %v2295_v16, %v2267_v9 }
 0x1c5   : > { %v2336_v29 = vpop.f32.mrf.mxu3 }
 0x1c6   : > { %v2370_v14 = vpop.f32.mrf.mxu0  ;;  %v2337_v35 = vadd.f32 %v2336_v29, %v2308_v34 }
 0x1c8   : > { %v2366_v40 = vadd.f32 %v2365_v3, %v2337_v35 }
 0x1c9   : > { %v2312_v15 = vpop.f32.mrf.mxu2  ;;  %v3957_v60 = vpop.f32.mrf.mxu1 }
 0x1ca   : > { %v2313_v58 = vadd.f32 %v2312_v15, %v3933_v51 }
 0x1cd   : > { %v2338_v0 = vpop.f32.mrf.mxu3 }
 0x1ce   : > { %v3943_v38 = vpop.f32.mrf.mxu0  ;;  %v2339_v48 = vadd.f32 %v2338_v0, %v2310_v42 }
 0x1d0   : > { %v2368_v43 = vadd.f32 %v2367_v8, %v2339_v48 }
 0x1d1   : > { %v2314_v46 = vpop.f32.mrf.mxu2  ;;  %v3961_v26 = vpop.f32.mrf.mxu1 }
 0x1d2   : > { %v2315_v8 = vadd.f32 %v2314_v46, %v3936_v17 }
 0x1d5   : > { %v2341_v18 = vpop.f32.mrf.mxu3 }
 0x1d6   : > { %v3945_v19 = vpop.f32.mrf.mxu0  ;;  %v2342_v62 = vadd.f32 %v2341_v18, %v2313_v58 }
 0x1d8   : > { %v2371_v31 = vadd.f32 %v2370_v14, %v2342_v62 }
 0x1d9   : > { %v3947_v21 = vpop.f32.mrf.mxu2  ;;  %v2409_v2 = vpop.f32.mrf.mxu1 }
 0x1da   : > { %v2400_v0 = vadd.f32 %v2399_v50, %v2371_v31 }
 0x1dd   : > { %v2343_v22 = vpop.f32.mrf.mxu3 }
 0x1de   : > { %v3949_v23 = vpop.f32.mrf.mxu0  ;;  %v2344_v13 = vadd.f32 %v2343_v22, %v2315_v8  ;;  %v2318_v22 = vadd.f32 %v3947_v21, %v3939_v5 }
 0x1e1   : > { %v3951_v27 = vpop.f32.mrf.mxu2 }
 0x1e2   : > { %v2320_v21 = vadd.f32 %v3951_v27, %v3941_v11 }
 0x1e5   : > { %v3955_v28 = vpop.f32.mrf.mxu3 }
 0x1e6   : > { %v2380_v10 = vpop.f32.mrf.mxu0  ;;  %v2347_v50 = vadd.f32 %v3955_v28, %v2318_v22 }
 0x1e8   : > { %v2376_v42 = vadd.f32 %v3945_v19, %v2347_v50 }
 0x1e9   : > { %v2322_v30 = vpop.f32.mrf.mxu2 }
 0x1ea   : > { %v2323_v55 = vadd.f32 %v2322_v30, %v2294_v44  ;;  %v2373_v30 = vadd.f32 %v3943_v38, %v2344_v13 }
 0x1ed   : > { %v3959_v32 = vpop.f32.mrf.mxu3 }
 0x1ee   : > { %v2382_v33 = vpop.f32.mrf.mxu0 }
 0x1f1   : > { %v2324_v61 = vpop.f32.mrf.mxu2 }
 0x1f2   : > { %v2325_v3 = vadd.f32 %v2324_v61, %v2296_v63 }
 0x1f5   : > { %v2351_v39 = vpop.f32.mrf.mxu3 }
 0x1f6   : > { %v2394_v41 = vpop.f32.mrf.mxu0  ;;  %v2352_v56 = vadd.f32 %v2351_v39, %v2323_v55  ;;  %v2402_v39 = vadd.f32 %v3953_v24, %v2373_v30  ;;  %v2405_v24 = vadd.f32 %v3957_v60, %v2376_v42 }
 0x1f7   : > { %v2395_v1 = vadd.f32 %v2394_v41, %v2366_v40 }
 0x1f8   : > { %v2381_v6 = vadd.f32 %v2380_v10, %v2352_v56  ;;  %v2411_v10 = vpop.f32.mrf.mxu1 }
 0x1f9   : > { %v2423_v54 = vpop.f32.mrf.mxu2 }
 0x1fa   : > { %v2424_v36 = vadd.f32 %v2423_v54, %v2395_v1  ;;  %v2410_v51 = vadd.f32 %v2409_v2, %v2381_v6  ;;  %v2349_v1 = vadd.f32 %v3959_v32, %v2320_v21 }
 0x1fc   : > { %v2444_v12 = vadd.f32 %v3966_v45, %v2424_v36  ;;  %v2378_v48 = vadd.f32 %v3949_v23, %v2349_v1 }
 0x1fd   : > { %v2353_v20 = vpop.f32.mrf.mxu3 }
 0x1fe   : > { %v2452_v59 = vmax.f32 %v2444_v12, 0.0  ;;  %v2396_v53 = vpop.f32.mrf.mxu0  ;;  %v2354_v52 = vadd.f32 %v2353_v20, %v2325_v3  ;;  %v2407_v55 = vadd.f32 %v3961_v26, %v2378_v48 }
 0x1ff   : > { %v2397_v25 = vadd.f32 %v2396_v53, %v2368_v43 }
 0x200   : > { %2460 = vst [vmem:[%s3971_s7] sm:$0xff] %v2452_v59  ;;  %v2383_v29 = vadd.f32 %v2382_v33, %v2354_v52 }
 0x201   : > { %v2425_v47 = vpop.f32.mrf.mxu2 }
 0x202   : > { %v2426_v4 = vadd.f32 %v2425_v47, %v2397_v25  ;;  %v2412_v17 = vadd.f32 %v2411_v10, %v2383_v29 }
 0x204   : > { %v2445_v49 = vadd.f32 %v3966_v45, %v2426_v4 }
 0x205   : > { %v2438_v7 = vpop.f32.mrf.mxu3 }
 0x206   : > { %v2453_v9 = vmax.f32 %v2445_v49, 0.0  ;;  %v2439_v57 = vadd.f32 %v2438_v7, %v2410_v51 }
 0x208   : > { %2461 = vst [vmem:[%s3971_s7 + $0x8] sm:$0xff] %v2453_v9  ;;  %v2450_v15 = vadd.f32 %v3966_v45, %v2439_v57 }
 0x209   : > { %v2428_v16 = vpop.f32.mrf.mxu2 }
 0x20a   : > { %v2458_v18 = vmax.f32 %v2450_v15, 0.0  ;;  %v2429_v14 = vadd.f32 %v2428_v16, %v2400_v0 }
 0x20c   : > { %2466 = vst [vmem:[%s3971_s7 + $0x30] sm:$0xff] %v2458_v18  ;;  %v2446_v34 = vadd.f32 %v3966_v45, %v2429_v14 }
 0x20d   : > { %v2440_v46 = vpop.f32.mrf.mxu3 }
 0x20e   : > { %v2454_v33 = vmax.f32 %v2446_v34, 0.0  ;;  %v2441_v35 = vadd.f32 %v2440_v46, %v2412_v17 }
 0x210   : > { %2462 = vst [vmem:[%s3971_s7 + $0x10] sm:$0xff] %v2454_v33  ;;  %v2451_v61 = vadd.f32 %v3966_v45, %v2441_v35 }
 0x211   : > { %v2430_v38 = vpop.f32.mrf.mxu2 }
 0x212   : > { %v2459_v40 = vmax.f32 %v2451_v61, 0.0  ;;  %v2431_v41 = vadd.f32 %v2430_v38, %v2402_v39 }
 0x214   : > { %2467 = vst [vmem:[%s3971_s7 + $0x38] sm:$0xff] %v2459_v40  ;;  %v2447_v5 = vadd.f32 %v3966_v45, %v2431_v41 }
 0x216   : > { %v2455_v28 = vmax.f32 %v2447_v5, 0.0 }
 0x218   : > { %2463 = vst [vmem:[%s3971_s7 + $0x18] sm:$0xff] %v2455_v28 }
 0x219   : > { %v2433_v44 = vpop.f32.mrf.mxu2 }
 0x21a   : > { %v2434_v37 = vadd.f32 %v2433_v44, %v2405_v24 }
 0x21c   : > { %v2448_v19 = vadd.f32 %v3966_v45, %v2434_v37 }
 0x21e   : > { %v2456_v54 = vmax.f32 %v2448_v19, 0.0 }
 0x220   : > { %2464 = vst [vmem:[%s3971_s7 + $0x20] sm:$0xff] %v2456_v54 }
 0x221   : > { %v2435_v11 = vpop.f32.mrf.mxu2 }
 0x222   : > { %v2436_v27 = vadd.f32 %v2435_v11, %v2407_v55 }
 0x224   : > { %v2449_v23 = vadd.f32 %v3966_v45, %v2436_v27 }
 0x226   : > { %v2457_v60 = vmax.f32 %v2449_v23, 0.0 }
 0x228   : > { %2465 = vst [vmem:[%s3971_s7 + $0x28] sm:$0xff] %v2457_v60 }
 0x229   : > { %3476 = shalt.err (!%p3473_p10)
}
 0x22a   : > { %s3528_s24 = smov 128   ;;  %s3529_s11 = smov 8  }
 0x22b   : > { %3294 = dma.vmem_to_hbm [thread:$0]  (%p3627_p5), %s2482_s28, 1024, %s2484_s29, %s2469_s19, %s3528_s24, %s3528_s24, %s3529_s11  }
 0x22c PF: > { %s2498_s6 = sand.u32 1, %s3507_s15   ;;  %p4055_p12 = scmp.ge.s32.totalorder %s3519_s18, 2 }
 0x22d   : > { %s2499_s7 = scalar_lea.sflag [#allocation6], %s2498_s6 }
 0x22e   : > { %p3308_p13 = pnand %p4055_p12, %p3590_p6 }
 0x230   : > { %p3309_p0 = pneg %p3308_p13 }
 0x232   : > { %3502 = dma.done.wait (%p3309_p0), %s2499_s7, 1024  }
 0x233   : > { %3504 = vsyncadd (%p3309_p0), %s2499_s7, 4294966272  ;;  %p18_p3 = scmp.ge.s32.totalorder %s3614_s12, 4   ;;  %s4056_s15 = smov %s3511_s16 }
 0x234   : > { %s4057_s16 = smov %s3515_s17  ;;  %s4058_s17 = smov %s3623_s20 }
 0x235   : > { %s4059_s18 = smov %s3614_s12  ;;  %20 = sbr.rel (!%p18_p3) target bundleno = 6 (0x6), region = 92 }
 0x23a   :  { %2505 = vsyncpa [#allocation5], 1 }
 0x23b   :  { %2507 = vsyncpa [#allocation5 + $0x1], 1 }
 0x23c   :  { %2508 = vsyncpa [#allocation8], 1 }
 0x23d   :  { %2509 = vsyncpa [#allocation6], 1 }
 0x23e   :  { %2511 = vsyncpa [#allocation6 + $0x1], 1 }

</bundles_post_ra>
